<compile_context>
chip_gen: v7x
topology: tpu7x:2x2x1
jax: 0.10.0
libtpu: 0.0.40
codegen_flags: <defaults>
</compile_context>

<pallas_src>
import functools

import jax
import jax.numpy as jnp
from jax.experimental import pallas as pl
from jax.experimental.pallas import tpu as pltpu

INPUT_SIZE = 64
HIDDEN1 = 1024
HIDDEN2 = 512
CLASS_NUM = 2
CLASS_PAD = 128  # lane-dense padded width for the final layer / output store


def mlp_kernel(x_ref, w1_ref, b1_ref, w2_ref, b2_ref, w3_ref, b3_ref, o_ref):
    # Fused: relu(x @ W1 + b1) -> relu(@ W2 + b2) -> @ W3 + b3
    # bf16 operands into the MXU, f32 accumulation throughout.
    x = x_ref[...].astype(jnp.bfloat16)

    h1 = jnp.dot(x, w1_ref[...], preferred_element_type=jnp.float32) + b1_ref[...]
    h1 = jnp.maximum(h1, 0.0).astype(jnp.bfloat16)

    h2 = jnp.dot(h1, w2_ref[...], preferred_element_type=jnp.float32) + b2_ref[...]
    h2 = jnp.maximum(h2, 0.0).astype(jnp.bfloat16)

    out = jnp.dot(h2, w3_ref[...], preferred_element_type=jnp.float32) + b3_ref[...]
    o_ref[...] = out.astype(o_ref.dtype)


def _choose_block_b(batch):
    # Small batches: one grid step covering the whole (sublane-aligned) batch.
    # Large batches: cap at 256 so the parallel batch axis has >=2 steps
    # (lets v7x megacore shard across its 2 TensorCores) and tiles stay
    # comfortably inside every generation's scoped VMEM limit.
    if batch <= 256:
        return max(8, ((batch + 7) // 8) * 8)
    return 256


@jax.jit
def mlp_forward(x, w1, b1, w2, b2, w3, b3):
    B, in_size = x.shape
    assert in_size == INPUT_SIZE

    block_b = _choose_block_b(B)
    b_pad = ((B + block_b - 1) // block_b) * block_b
    if b_pad != B:
        x = jnp.pad(x, ((0, b_pad - B), (0, 0)))

    # bf16 weights for the MXU (no-op casts if already bf16); biases stay f32
    # since they are added to the f32 accumulator.
    w1 = w1.astype(jnp.bfloat16)
    w2 = w2.astype(jnp.bfloat16)
    w3 = w3.astype(jnp.bfloat16)
    b1 = b1.astype(jnp.float32)
    b2 = b2.astype(jnp.float32)
    b3 = b3.astype(jnp.float32)

    # Pad the tiny N=2 final layer out to 128 lanes so the output store is an
    # unmasked, lane-dense vst; the extra columns are zeros and sliced off.
    w3p = jnp.pad(w3, ((0, 0), (0, CLASS_PAD - CLASS_NUM)))
    b3p = jnp.pad(b3, ((0, 0), (0, CLASS_PAD - CLASS_NUM)))

    grid = (b_pad // block_b,)
    num_steps = grid[0]

    flops = 2 * b_pad * (INPUT_SIZE * HIDDEN1 + HIDDEN1 * HIDDEN2 + HIDDEN2 * CLASS_PAD)
    bytes_accessed = (
        x.size * x.dtype.itemsize
        + w1.size * 2 + w2.size * 2 + w3p.size * 2
        + b1.size * 4 + b2.size * 4 + b3p.size * 4
        + b_pad * CLASS_PAD * 4
    )

    out_padded = pl.pallas_call(
        mlp_kernel,
        out_shape=jax.ShapeDtypeStruct((b_pad, CLASS_PAD), jnp.float32),
        grid_spec=pltpu.PrefetchScalarGridSpec(
            num_scalar_prefetch=0,
            grid=grid,
            in_specs=[
                pl.BlockSpec((block_b, INPUT_SIZE), lambda i: (i, 0)),   # x tile
                pl.BlockSpec((INPUT_SIZE, HIDDEN1), lambda i: (0, 0)),   # W1 (resident)
                pl.BlockSpec((1, HIDDEN1), lambda i: (0, 0)),            # b1
                pl.BlockSpec((HIDDEN1, HIDDEN2), lambda i: (0, 0)),      # W2 (resident)
                pl.BlockSpec((1, HIDDEN2), lambda i: (0, 0)),            # b2
                pl.BlockSpec((HIDDEN2, CLASS_PAD), lambda i: (0, 0)),    # W3 (padded)
                pl.BlockSpec((1, CLASS_PAD), lambda i: (0, 0)),          # b3 (padded)
            ],
            out_specs=pl.BlockSpec((block_b, CLASS_PAD), lambda i: (i, 0)),
        ),
        compiler_params=pltpu.CompilerParams(
            dimension_semantics=("parallel",),
            # Total live VMEM (bf16 weights double-buffered ~2.6 MiB + tiles)
            # is far below this; explicit limit keeps larger block_b safe on
            # v5e's 16 MiB default scoped limit and within v7x's 64 MiB VMEM.
            vmem_limit_bytes=32 * 1024 * 1024,
        ),
        cost_estimate=pl.CostEstimate(
            flops=flops, transcendentals=0, bytes_accessed=bytes_accessed
        ),
    )(x, w1, b1, w2, b2, w3p, b3p)

    return out_padded[:B, :CLASS_NUM]


def init_linear(key, fan_in, fan_out):
    """Deterministic init mimicking torch.nn.Linear (uniform +-1/sqrt(fan_in)).

    Returns W as [fan_in, fan_out] and b as [1, fan_out], both f32.
    """
    kw, kb = jax.random.split(key)
    bound = 1.0 / jnp.sqrt(jnp.float32(fan_in))
    w = jax.random.uniform(kw, (fan_in, fan_out), jnp.float32, -bound, bound)
    b = jax.random.uniform(kb, (1, fan_out), jnp.float32, -bound, bound)
    return w, b


if __name__ == "__main__":
    key = jax.random.PRNGKey(0)
    k_x, k1, k2, k3 = jax.random.split(key, 4)

    B = 16  # small batch consistent with the module's input_size=64
    x = jax.random.normal(k_x, (B, INPUT_SIZE), jnp.float32)

    w1, b1 = init_linear(k1, INPUT_SIZE, HIDDEN1)
    w2, b2 = init_linear(k2, HIDDEN1, HIDDEN2)
    w3, b3 = init_linear(k3, HIDDEN2, CLASS_NUM)

    out = mlp_forward(x, w1, b1, w2, b2, w3, b3)
    out = jax.block_until_ready(out)
    assert out.shape == (B, CLASS_NUM)

    # Pure-JAX reference using the same bf16 weight cast + f32 accumulation.
    xb = x.astype(jnp.bfloat16)
    w1b, w2b, w3b = (w.astype(jnp.bfloat16) for w in (w1, w2, w3))
    h = jnp.maximum(jnp.dot(xb, w1b, preferred_element_type=jnp.float32) + b1, 0.0)
    h = jnp.maximum(
        jnp.dot(h.astype(jnp.bfloat16), w2b, preferred_element_type=jnp.float32) + b2, 0.0
    )
    ref = jnp.dot(h.astype(jnp.bfloat16), w3b, preferred_element_type=jnp.float32) + b3
    assert jnp.allclose(out, ref, atol=1e-2, rtol=1e-2)

    # Loose sanity check against the full-f32 reference as well.
    hf = jnp.maximum(x @ w1 + b1, 0.0)
    hf = jnp.maximum(hf @ w2 + b2, 0.0)
    ref_f32 = hf @ w3 + b3
    assert jnp.allclose(out, ref_f32, atol=5e-2, rtol=5e-2)

    print("KERNEL_OK")
</pallas_src>

<mosaic_0001>
module attributes {stable_mosaic.version = 11 : i64} {
  func.func @mlp_kernel(%arg0: i32, %arg1: memref<16x64xf32, #tpu.memory_space<vmem>>, %arg2: memref<64x1024xbf16, #tpu.memory_space<vmem>>, %arg3: memref<1x1024xf32, #tpu.memory_space<vmem>>, %arg4: memref<1024x512xbf16, #tpu.memory_space<vmem>>, %arg5: memref<1x512xf32, #tpu.memory_space<vmem>>, %arg6: memref<512x128xbf16, #tpu.memory_space<vmem>>, %arg7: memref<1x128xf32, #tpu.memory_space<vmem>>, %arg8: memref<16x128xf32, #tpu.memory_space<vmem>>) attributes {dimension_semantics = [#tpu.dimension_semantics<parallel>], iteration_bounds = array<i64: 1>, scalar_prefetch = 0 : i64, scratch_operands = 0 : i64, tpu.core_type = #tpu.core_type<tc>, window_params = [{transform_indices = @transform_0, window_bounds = array<i64: 16, 64>}, {pipeline_mode = #tpu.pipeline_mode<synchronous>, transform_indices = @transform_1, window_bounds = array<i64: 64, 1024>}, {pipeline_mode = #tpu.pipeline_mode<synchronous>, transform_indices = @transform_2, window_bounds = array<i64: 1, 1024>}, {pipeline_mode = #tpu.pipeline_mode<synchronous>, transform_indices = @transform_3, window_bounds = array<i64: 1024, 512>}, {pipeline_mode = #tpu.pipeline_mode<synchronous>, transform_indices = @transform_4, window_bounds = array<i64: 1, 512>}, {pipeline_mode = #tpu.pipeline_mode<synchronous>, transform_indices = @transform_5, window_bounds = array<i64: 512, 128>}, {pipeline_mode = #tpu.pipeline_mode<synchronous>, transform_indices = @transform_6, window_bounds = array<i64: 1, 128>}, {transform_indices = @transform_7, window_bounds = array<i64: 16, 128>}]} {
    %c0 = arith.constant 0 : index
    %c0_0 = arith.constant 0 : index
    %0 = vector.load %arg1[%c0, %c0_0] : memref<16x64xf32, #tpu.memory_space<vmem>>, vector<16x64xf32>
    %1 = arith.truncf %0 : vector<16x64xf32> to vector<16x64xbf16>
    %c0_1 = arith.constant 0 : index
    %c0_2 = arith.constant 0 : index
    %2 = vector.load %arg2[%c0_1, %c0_2] : memref<64x1024xbf16, #tpu.memory_space<vmem>>, vector<64x1024xbf16>
    %cst = arith.constant dense<0.000000e+00> : vector<16x1024xf32>
    %3 = tpu.matmul %1, %2, %cst {dimension_numbers = #tpu.dot_dimension_numbers<[1], [0], [0], [1], [0, 0, 1, 1], [], []>} : vector<16x64xbf16>, vector<64x1024xbf16>, vector<16x1024xf32> -> vector<16x1024xf32>
    %c0_3 = arith.constant 0 : index
    %c0_4 = arith.constant 0 : index
    %4 = vector.load %arg3[%c0_3, %c0_4] : memref<1x1024xf32, #tpu.memory_space<vmem>>, vector<1x1024xf32>
    %5 = vector.broadcast %4 : vector<1x1024xf32> to vector<16x1024xf32>
    %6 = arith.addf %3, %5 : vector<16x1024xf32>
    %cst_5 = arith.constant 0.000000e+00 : f32
    %7 = vector.broadcast %cst_5 : f32 to vector<16x1024xf32>
    %8 = arith.maximumf %6, %7 : vector<16x1024xf32>
    %9 = arith.truncf %8 : vector<16x1024xf32> to vector<16x1024xbf16>
    %c0_6 = arith.constant 0 : index
    %c0_7 = arith.constant 0 : index
    %10 = vector.load %arg4[%c0_6, %c0_7] : memref<1024x512xbf16, #tpu.memory_space<vmem>>, vector<1024x512xbf16>
    %cst_8 = arith.constant dense<0.000000e+00> : vector<16x512xf32>
    %11 = tpu.matmul %9, %10, %cst_8 {dimension_numbers = #tpu.dot_dimension_numbers<[1], [0], [0], [1], [0, 0, 1, 1], [], []>} : vector<16x1024xbf16>, vector<1024x512xbf16>, vector<16x512xf32> -> vector<16x512xf32>
    %c0_9 = arith.constant 0 : index
    %c0_10 = arith.constant 0 : index
    %12 = vector.load %arg5[%c0_9, %c0_10] : memref<1x512xf32, #tpu.memory_space<vmem>>, vector<1x512xf32>
    %13 = vector.broadcast %12 : vector<1x512xf32> to vector<16x512xf32>
    %14 = arith.addf %11, %13 : vector<16x512xf32>
    %cst_11 = arith.constant 0.000000e+00 : f32
    %15 = vector.broadcast %cst_11 : f32 to vector<16x512xf32>
    %16 = arith.maximumf %14, %15 : vector<16x512xf32>
    %17 = arith.truncf %16 : vector<16x512xf32> to vector<16x512xbf16>
    %c0_12 = arith.constant 0 : index
    %c0_13 = arith.constant 0 : index
    %18 = vector.load %arg6[%c0_12, %c0_13] : memref<512x128xbf16, #tpu.memory_space<vmem>>, vector<512x128xbf16>
    %cst_14 = arith.constant dense<0.000000e+00> : vector<16x128xf32>
    %19 = tpu.matmul %17, %18, %cst_14 {dimension_numbers = #tpu.dot_dimension_numbers<[1], [0], [0], [1], [0, 0, 1, 1], [], []>} : vector<16x512xbf16>, vector<512x128xbf16>, vector<16x128xf32> -> vector<16x128xf32>
    %c0_15 = arith.constant 0 : index
    %c0_16 = arith.constant 0 : index
    %20 = vector.load %arg7[%c0_15, %c0_16] : memref<1x128xf32, #tpu.memory_space<vmem>>, vector<1x128xf32>
    %21 = vector.broadcast %20 : vector<1x128xf32> to vector<16x128xf32>
    %22 = arith.addf %19, %21 : vector<16x128xf32>
    %c0_17 = arith.constant 0 : index
    %c0_18 = arith.constant 0 : index
    %23 = vector.load %arg8[%c0_17, %c0_18] : memref<16x128xf32, #tpu.memory_space<vmem>>, vector<16x128xf32>
    tpu.vector_store %arg8[%c0_17, %c0_18], %22 {strides = array<i32>} : memref<16x128xf32, #tpu.memory_space<vmem>>, vector<16x128xf32>,
    return
  }
  func.func @transform_0(%arg0: i32) -> (i32, i32) {
    %c0_i32 = arith.constant 0 : i32
    %c0_i32_0 = arith.constant 0 : i32
    return %arg0, %c0_i32 : i32, i32
  }
  func.func @transform_1(%arg0: i32) -> (i32, i32) {
    %c0_i32 = arith.constant 0 : i32
    %c0_i32_0 = arith.constant 0 : i32
    %c0_i32_1 = arith.constant 0 : i32
    return %c0_i32, %c0_i32_0 : i32, i32
  }
  func.func @transform_2(%arg0: i32) -> (i32, i32) {
    %c0_i32 = arith.constant 0 : i32
    %c0_i32_0 = arith.constant 0 : i32
    %c0_i32_1 = arith.constant 0 : i32
    return %c0_i32, %c0_i32_0 : i32, i32
  }
  func.func @transform_3(%arg0: i32) -> (i32, i32) {
    %c0_i32 = arith.constant 0 : i32
    %c0_i32_0 = arith.constant 0 : i32
    %c0_i32_1 = arith.constant 0 : i32
    return %c0_i32, %c0_i32_0 : i32, i32
  }
  func.func @transform_4(%arg0: i32) -> (i32, i32) {
    %c0_i32 = arith.constant 0 : i32
    %c0_i32_0 = arith.constant 0 : i32
    %c0_i32_1 = arith.constant 0 : i32
    return %c0_i32, %c0_i32_0 : i32, i32
  }
  func.func @transform_5(%arg0: i32) -> (i32, i32) {
    %c0_i32 = arith.constant 0 : i32
    %c0_i32_0 = arith.constant 0 : i32
    %c0_i32_1 = arith.constant 0 : i32
    return %c0_i32, %c0_i32_0 : i32, i32
  }
  func.func @transform_6(%arg0: i32) -> (i32, i32) {
    %c0_i32 = arith.constant 0 : i32
    %c0_i32_0 = arith.constant 0 : i32
    %c0_i32_1 = arith.constant 0 : i32
    return %c0_i32, %c0_i32_0 : i32, i32
  }
  func.func @transform_7(%arg0: i32) -> (i32, i32) {
    %c0_i32 = arith.constant 0 : i32
    %c0_i32_0 = arith.constant 0 : i32
    return %arg0, %c0_i32 : i32, i32
  }
}

</mosaic_0001>

<bundles_post_ra>
// kernel: mlp_forward.1
= control target key start
LH: loop header
LB: loop body
LE: loop exit
PB: predicated region body
PF: predicated region fallthrough
CT: control target
= control target key end

     0   :  { %v3547_v3 = vmov 0   ;;  %vm264_vm0 = vcmask 523264   ;;  %s4639_s1 = inlined_call_operand.vmem [shape: bf16[64,1024], index: 1, kind: input, shape index: {}]   ;;  %s4640_s0 = inlined_call_operand.vmem [shape: f32[16,64], index: 0, kind: input, shape index: {}]   ;;  %s4641_s3 = inlined_call_operand.vmem [shape: bf16[1024,512], index: 3, kind: input, shape index: {}]   ;;  %s4642_s2 = inlined_call_operand.vmem [shape: f32[1,1024], index: 2, kind: input, shape index: {}]   ;;  %s4643_s5 = inlined_call_operand.vmem [shape: bf16[512,128], index: 5, kind: input, shape index: {}]   ;;  %s4644_s4 = inlined_call_operand.vmem [shape: f32[1,512], index: 4, kind: input, shape index: {}]   ;;  %s4645_s6 = inlined_call_operand.vmem [shape: f32[1,128], index: 6, kind: input, shape index: {}]   ;;  %s4646_s7 = inlined_call_operand.vmem [shape: f32[16,128], index: 7, kind: output, shape index: {}]  }
   0x1   :  { %v30_v0 = vld [vmem:[%s4639_s1] sm:$0xff]  ;;  %300 = vmatprep.mubr.bf16.mxu0 %v3547_v3  ;;  %343 = vmatprep.mubr.bf16.mxu1 %v3547_v3  ;;  %v31_v10 = vld [vmem:[%s4639_s1 + $0x8] sm:$0xff]  ;;  %v32_v29 = vld [vmem:[%s4639_s1 + $0x10] sm:$0xff] }
   0x2   :  { %v34_v1 = vld [vmem:[%s4639_s1 + $0x20] sm:$0xff]  ;;  %v35_v11 = vld [vmem:[%s4639_s1 + $0x28] sm:$0xff]  ;;  %v36_v30 = vld [vmem:[%s4639_s1 + $0x30] sm:$0xff] }
   0x3   :  { %v38_v2 = vld [vmem:[%s4639_s1 + $0x40] sm:$0xff]  ;;  %v2730_v4 = vcombine.high %v30_v0, %v34_v1  ;;  %v2729_v5 = vcombine.low %v30_v0, %v34_v1  ;;  %v2732_v13 = vcombine.high %v31_v10, %v35_v11  ;;  %v2731_v14 = vcombine.low %v31_v10, %v35_v11  ;;  %v39_v15 = vld [vmem:[%s4639_s1 + $0x48] sm:$0xff]  ;;  %v40_v36 = vld [vmem:[%s4639_s1 + $0x50] sm:$0xff] }
   0x4   :  { %v42_v6 = vld [vmem:[%s4639_s1 + $0x60] sm:$0xff]  ;;  %v43_v16 = vld [vmem:[%s4639_s1 + $0x68] sm:$0xff]  ;;  %v2734_v37 = vcombine.high %v32_v29, %v36_v30  ;;  %v44_v38 = vld [vmem:[%s4639_s1 + $0x70] sm:$0xff]  ;;  %v2733_v43 = vcombine.low %v32_v29, %v36_v30 }
   0x5   :  { %v2738_v7 = vcombine.high %v38_v2, %v42_v6  ;;  %v46_v8 = vld [vmem:[%s4639_s1 + $0x80] sm:$0xff]  ;;  %268 = vmatprep.subr.bf16.mxu0 %v2730_v4  ;;  %v2737_v12 = vcombine.low %v38_v2, %v42_v6  ;;  %v2740_v18 = vcombine.high %v39_v15, %v43_v16  ;;  %v47_v19 = vld [vmem:[%s4639_s1 + $0x88] sm:$0xff]  ;;  %311 = vmatprep.subr.bf16.mxu1 %v2732_v13  ;;  %v33_v39 = vld [vmem:[%s4639_s1 + $0x18] sm:$0xff] }
   0x6   :  { %v50_v9 = vld [vmem:[%s4639_s1 + $0xa0] sm:$0xff]  ;;  %269 = vmatpush1.bf16.msra.mxu0 %v2729_v5  ;;  %v51_v20 = vld [vmem:[%s4639_s1 + $0xa8] sm:$0xff]  ;;  %312 = vmatpush1.bf16.msra.mxu1 %v2731_v14  ;;  %v2739_v23 = vcombine.low %v39_v15, %v43_v16  ;;  %v37_v40 = vld [vmem:[%s4639_s1 + $0x38] sm:$0xff]  ;;  %v2742_v45 = vcombine.high %v40_v36, %v44_v38  ;;  %v2741_v51 = vcombine.low %v40_v36, %v44_v38 }
   0x7   :  { %270 = vmatprep.subr.bf16.mxu0 %v2738_v7  ;;  %v2746_v17 = vcombine.high %v46_v8, %v50_v9  ;;  %v54_v21 = vld [vmem:[%s4639_s1 + $0xc0] sm:$0xff]  ;;  %v2745_v24 = vcombine.low %v46_v8, %v50_v9  ;;  %313 = vmatprep.subr.bf16.mxu1 %v2740_v18  ;;  %v2748_v25 = vcombine.high %v47_v19, %v51_v20  ;;  %v55_v27 = vld [vmem:[%s4639_s1 + $0xc8] sm:$0xff]  ;;  %v48_v44 = vld [vmem:[%s4639_s1 + $0x90] sm:$0xff] }
   0x8   :  { %v58_v22 = vld [vmem:[%s4639_s1 + $0xe0] sm:$0xff]  ;;  %v59_v28 = vld [vmem:[%s4639_s1 + $0xe8] sm:$0xff]  ;;  %v2747_v32 = vcombine.low %v47_v19, %v51_v20  ;;  %v2736_v46 = vcombine.high %v33_v39, %v37_v40  ;;  %v41_v47 = vld [vmem:[%s4639_s1 + $0x58] sm:$0xff]  ;;  %v2735_v50 = vcombine.low %v33_v39, %v37_v40 }
   0x9   :  { %v2754_v26 = vcombine.high %v54_v21, %v58_v22  ;;  %v27_v31 = vld [vmem:[%s4640_s0] sm:$0xff]  ;;  %v2753_v33 = vcombine.low %v54_v21, %v58_v22  ;;  %v28_v34 = vld [vmem:[%s4640_s0 + $0x8] sm:$0xff]  ;;  %v2756_v35 = vcombine.high %v55_v27, %v59_v28  ;;  %v2755_v42 = vcombine.low %v55_v27, %v59_v28  ;;  %v45_v48 = vld [vmem:[%s4639_s1 + $0x78] sm:$0xff] }
   0xa   :  { %271 = vmatpush1.bf16.msra.mxu0 %v2737_v12  ;;  %314 = vmatpush1.bf16.msra.mxu1 %v2739_v23  ;;  %v3662_v41 = vpack.c.bf16 %v28_v34, %v27_v31  ;;  %v52_v49 = vld [vmem:[%s4639_s1 + $0xb0] sm:$0xff]  ;;  %v2744_v53 = vcombine.high %v41_v47, %v45_v48  ;;  %v49_v55 = vld [vmem:[%s4639_s1 + $0x98] sm:$0xff]  ;;  %v2743_v58 = vcombine.low %v41_v47, %v45_v48 }
   0xb   :  { %272 = vmatprep.subr.bf16.mxu0 %v2746_v17  ;;  %315 = vmatprep.subr.bf16.mxu1 %v2748_v25  ;;  %v56_v52 = vld [vmem:[%s4639_s1 + $0xd0] sm:$0xff]  ;;  %v2750_v54 = vcombine.high %v48_v44, %v52_v49  ;;  %v53_v56 = vld [vmem:[%s4639_s1 + $0xb8] sm:$0xff]  ;;  %v2749_v59 = vcombine.low %v48_v44, %v52_v49 }
   0xc   :  { %v60_v57 = vld [vmem:[%s4639_s1 + $0xf0] sm:$0xff]  ;;  %v2752_v60 = vcombine.high %v49_v55, %v53_v56  ;;  %v57_v62 = vld [vmem:[%s4639_s1 + $0xd8] sm:$0xff]  ;;  %v2751_v0 = vcombine.low %v49_v55, %v53_v56 }
   0xd   :  { %v2758_v61 = vcombine.high %v56_v52, %v60_v57  ;;  %v61_v63 = vld [vmem:[%s4639_s1 + $0xf8] sm:$0xff]  ;;  %v2757_v1 = vcombine.low %v56_v52, %v60_v57  ;;  %v3131_v5 = vld [vmem:[%s4641_s3] ss:$16 sps:$4 sm:$0xff]   ;;  %v3139_v7 = vld [vmem:[%s4641_s3 + $0x24] ss:$16 sps:$4 sm:$0xff]  }
   0xe   :  { %273 = vmatpush1.bf16.msra.mxu0 %v2745_v24  ;;  %316 = vmatpush1.bf16.msra.mxu1 %v2747_v32  ;;  %v2760_v2 = vcombine.high %v57_v62, %v61_v63  ;;  %v2759_v4 = vcombine.low %v57_v62, %v61_v63  ;;  %v3136_v6 = vld [vmem:[%s4641_s3 + $0xc] ss:$16 sps:$4 sm:$0xff]   ;;  %v3134_v8 = vld [vmem:[%s4641_s3 + $0x8] ss:$16 sps:$4 sm:$0xff]   ;;  %v3137_v9 = vld [vmem:[%s4641_s3 + $0x20] ss:$16 sps:$4 sm:$0xff]  }
   0xf   :  { %274 = vmatprep.subr.bf16.mxu0 %v2754_v26  ;;  %317 = vmatprep.subr.bf16.mxu1 %v2756_v35  ;;  %v3142_v10 = vld [vmem:[%s4641_s3 + $0x2c] ss:$16 sps:$4 sm:$0xff]   ;;  %v3145_v11 = vld [vmem:[%s4641_s3 + $0x44] ss:$16 sps:$4 sm:$0xff]   ;;  %v3140_v12 = vld [vmem:[%s4641_s3 + $0x28] ss:$16 sps:$4 sm:$0xff]  }
  0x10   :  { %v3143_v13 = vld [vmem:[%s4641_s3 + $0x40] ss:$16 sps:$4 sm:$0xff]   ;;  %v3148_v14 = vld [vmem:[%s4641_s3 + $0x4c] ss:$16 sps:$4 sm:$0xff]   ;;  %v3151_v15 = vld [vmem:[%s4641_s3 + $0x64] ss:$16 sps:$4 sm:$0xff]  }
  0x11   :  { %v3146_v16 = vld [vmem:[%s4641_s3 + $0x48] ss:$16 sps:$4 sm:$0xff]   ;;  %v3149_v17 = vld [vmem:[%s4641_s3 + $0x60] ss:$16 sps:$4 sm:$0xff]   ;;  %v3154_v18 = vld [vmem:[%s4641_s3 + $0x6c] ss:$16 sps:$4 sm:$0xff]  }
  0x12   :  { %275 = vmatpush1.bf16.msra.mxu0 %v2753_v33  ;;  %318 = vmatpush1.bf16.msra.mxu1 %v2755_v42  ;;  %v3157_v19 = vld [vmem:[%s4641_s3 + $0x84] ss:$16 sps:$4 sm:$0xff]   ;;  %v3152_v20 = vld [vmem:[%s4641_s3 + $0x68] ss:$16 sps:$4 sm:$0xff]   ;;  %v3155_v21 = vld [vmem:[%s4641_s3 + $0x80] ss:$16 sps:$4 sm:$0xff]  }
  0x13   :  { %354 = vmatprep.subr.bf16.mxu0 %v2734_v37  ;;  %397 = vmatprep.subr.bf16.mxu1 %v2736_v46  ;;  %v3160_v22 = vld [vmem:[%s4641_s3 + $0x8c] ss:$16 sps:$4 sm:$0xff]   ;;  %v3163_v23 = vld [vmem:[%s4641_s3 + $0xa4] ss:$16 sps:$4 sm:$0xff]   ;;  %v3158_v24 = vld [vmem:[%s4641_s3 + $0x88] ss:$16 sps:$4 sm:$0xff]  }
  0x14   :  { %v3161_v25 = vld [vmem:[%s4641_s3 + $0xa0] ss:$16 sps:$4 sm:$0xff]   ;;  %v3166_v26 = vld [vmem:[%s4641_s3 + $0xac] ss:$16 sps:$4 sm:$0xff]   ;;  %v3169_v27 = vld [vmem:[%s4641_s3 + $0xc4] ss:$16 sps:$4 sm:$0xff]  }
  0x15   :  { %2761 = vmatmul.mubr.msk.bf16.vlgmr.msra.gmra.mrb[0].mxu0 %vm264_vm0, %v3662_v41  ;;  %2762 = vmatmul.mubr.msk.bf16.vlgmr.msra.gmra.mrb[0].mxu1 %vm264_vm0, %v3662_v41  ;;  %v3164_v28 = vld [vmem:[%s4641_s3 + $0xa8] ss:$16 sps:$4 sm:$0xff]   ;;  %v3167_v29 = vld [vmem:[%s4641_s3 + $0xc0] ss:$16 sps:$4 sm:$0xff]   ;;  %v3172_v30 = vld [vmem:[%s4641_s3 + $0xcc] ss:$16 sps:$4 sm:$0xff]  }
  0x16   :  { %355 = vmatpush1.bf16.msra.mxu0 %v2733_v43  ;;  %386 = vmatprep.mubr.bf16.mxu0 %v3547_v3  ;;  %v3175_v31 = vld [vmem:[%s4641_s3 + $0xe4] ss:$16 sps:$4 sm:$0xff]   ;;  %v3170_v32 = vld [vmem:[%s4641_s3 + $0xc8] ss:$16 sps:$4 sm:$0xff]   ;;  %v3173_v33 = vld [vmem:[%s4641_s3 + $0xe0] ss:$16 sps:$4 sm:$0xff]  }
  0x17   :  { %356 = vmatprep.subr.bf16.mxu0 %v2742_v45  ;;  %398 = vmatpush1.bf16.msra.mxu1 %v2735_v50  ;;  %v3178_v34 = vld [vmem:[%s4641_s3 + $0xec] ss:$16 sps:$4 sm:$0xff]   ;;  %v3181_v35 = vld [vmem:[%s4641_s3 + $0x104] ss:$16 sps:$4 sm:$0xff]   ;;  %v3176_v36 = vld [vmem:[%s4641_s3 + $0xe8] ss:$16 sps:$4 sm:$0xff]  }
  0x18   :  { %429 = vmatprep.mubr.bf16.mxu1 %v3547_v3  ;;  %399 = vmatprep.subr.bf16.mxu1 %v2744_v53  ;;  %v3133_v3 = vld [vmem:[%s4641_s3 + $0x4] ss:$16 sps:$4 sm:$0xff]   ;;  %v3179_v37 = vld [vmem:[%s4641_s3 + $0x100] ss:$16 sps:$4 sm:$0xff]   ;;  %v3184_v38 = vld [vmem:[%s4641_s3 + $0x10c] ss:$16 sps:$4 sm:$0xff]  }
  0x19   :  { %v3187_v39 = vld [vmem:[%s4641_s3 + $0x124] ss:$16 sps:$4 sm:$0xff]   ;;  %v3182_v40 = vld [vmem:[%s4641_s3 + $0x108] ss:$16 sps:$4 sm:$0xff]   ;;  %v3190_v42 = vld [vmem:[%s4641_s3 + $0x12c] ss:$16 sps:$4 sm:$0xff]  }
  0x1a   :  { %357 = vmatpush1.bf16.msra.mxu0 %v2741_v51  ;;  %v3193_v43 = vld [vmem:[%s4641_s3 + $0x144] ss:$16 sps:$4 sm:$0xff]   ;;  %v3188_v44 = vld [vmem:[%s4641_s3 + $0x128] ss:$16 sps:$4 sm:$0xff]   ;;  %v3191_v45 = vld [vmem:[%s4641_s3 + $0x140] ss:$16 sps:$4 sm:$0xff]  }
  0x1b   :  { %358 = vmatprep.subr.bf16.mxu0 %v2750_v54  ;;  %400 = vmatpush1.bf16.msra.mxu1 %v2743_v58  ;;  %v3196_v46 = vld [vmem:[%s4641_s3 + $0x14c] ss:$16 sps:$4 sm:$0xff]   ;;  %v3199_v47 = vld [vmem:[%s4641_s3 + $0x164] ss:$16 sps:$4 sm:$0xff]   ;;  %v3194_v48 = vld [vmem:[%s4641_s3 + $0x148] ss:$16 sps:$4 sm:$0xff]  }
  0x1c   :  { %401 = vmatprep.subr.bf16.mxu1 %v2752_v60  ;;  %v3197_v49 = vld [vmem:[%s4641_s3 + $0x160] ss:$16 sps:$4 sm:$0xff]   ;;  %v3202_v50 = vld [vmem:[%s4641_s3 + $0x16c] ss:$16 sps:$4 sm:$0xff]   ;;  %v3205_v51 = vld [vmem:[%s4641_s3 + $0x184] ss:$16 sps:$4 sm:$0xff]  }
  0x1d   :  { %v3200_v52 = vld [vmem:[%s4641_s3 + $0x168] ss:$16 sps:$4 sm:$0xff]   ;;  %v3203_v53 = vld [vmem:[%s4641_s3 + $0x180] ss:$16 sps:$4 sm:$0xff]   ;;  %v3208_v54 = vld [vmem:[%s4641_s3 + $0x18c] ss:$16 sps:$4 sm:$0xff]  }
  0x1e   :  { %359 = vmatpush1.bf16.msra.mxu0 %v2749_v59  ;;  %v3211_v55 = vld [vmem:[%s4641_s3 + $0x1a4] ss:$16 sps:$4 sm:$0xff]   ;;  %v3206_v56 = vld [vmem:[%s4641_s3 + $0x188] ss:$16 sps:$4 sm:$0xff]   ;;  %v3209_v57 = vld [vmem:[%s4641_s3 + $0x1a0] ss:$16 sps:$4 sm:$0xff]  }
  0x1f   :  { %360 = vmatprep.subr.bf16.mxu0 %v2758_v61  ;;  %402 = vmatpush1.bf16.msra.mxu1 %v2751_v0  ;;  %v3214_v58 = vld [vmem:[%s4641_s3 + $0x1ac] ss:$16 sps:$4 sm:$0xff]   ;;  %v3212_v59 = vld [vmem:[%s4641_s3 + $0x1a8] ss:$16 sps:$4 sm:$0xff]   ;;  %v3217_v60 = vld [vmem:[%s4641_s3 + $0x1c4] ss:$16 sps:$4 sm:$0xff]  }
  0x20   :  { %403 = vmatprep.subr.bf16.mxu1 %v2760_v2  ;;  %v3220_v61 = vld [vmem:[%s4641_s3 + $0x1cc] ss:$16 sps:$4 sm:$0xff]   ;;  %v3215_v62 = vld [vmem:[%s4641_s3 + $0x1c0] ss:$16 sps:$4 sm:$0xff]   ;;  %v3218_v63 = vld [vmem:[%s4641_s3 + $0x1c8] ss:$16 sps:$4 sm:$0xff]  }
  0x21   :  { %v3223_v0 = vld [vmem:[%s4641_s3 + $0x1e4] ss:$16 sps:$4 sm:$0xff]   ;;  %v3221_v2 = vld [vmem:[%s4641_s3 + $0x1e0] ss:$16 sps:$4 sm:$0xff]  }
  0x22   :  { %361 = vmatpush1.bf16.msra.mxu0 %v2757_v1  ;;  %v3226_v1 = vld [vmem:[%s4641_s3 + $0x1ec] ss:$16 sps:$4 sm:$0xff]  }
  0x23   :  { %2022 = vmatprep.subr.bf16.mxu0 %v3133_v3  ;;  %404 = vmatpush1.bf16.msra.mxu1 %v2759_v4  ;;  %v3224_v3 = vld [vmem:[%s4641_s3 + $0x1e8] ss:$16 sps:$4 sm:$0xff]   ;;  %v3229_v4 = vld [vmem:[%s4641_s3 + $0x204] ss:$16 sps:$4 sm:$0xff]  }
  0x24   :  { %2194 = vmatprep.subr.bf16.mxu1 %v3136_v6  ;;  %v64_v6 = vlaneseq }
  0x25   :  { %2763 = vmatmul.mubr.msk.bf16.vlgmr.msra.gmra.mrb[4].mxu0 %vm264_vm0, %v3662_v41 }
  0x26   :  { %2023 = vmatpush1.bf16.msra.mxu0 %v3131_v5  ;;  %2764 = vmatmul.mubr.msk.bf16.vlgmr.msra.gmra.mrb[4].mxu1 %vm264_vm0, %v3662_v41  ;;  %v3185_v41 = vld [vmem:[%s4641_s3 + $0x120] ss:$16 sps:$4 sm:$0xff]   ;;  %v3232_v5 = vld [vmem:[%s4641_s3 + $0x20c] ss:$16 sps:$4 sm:$0xff]  }
  0x27   :  { %2024 = vmatprep.subr.bf16.mxu0 %v3139_v7  ;;  %2195 = vmatpush1.bf16.msra.mxu1 %v3134_v8  ;;  %v3902_v7 = vshrl.u32 %v64_v6, 7  ;;  %v3248_v6 = vld [vmem:[%s4641_s3 + $0x268] ss:$16 sps:$4 sm:$0xff]  }
  0x28   :  { %2196 = vmatprep.subr.bf16.mxu1 %v3142_v10 }
  0x29   :  { %v66_v8 = vsub.s32 0, %v3902_v7  ;;  %v70_v10 = vsub.s32 1, %v3902_v7 }
  0x2a   :  { %2025 = vmatpush1.bf16.msra.mxu0 %v3137_v9  ;;  %v3908_v9 = vld [vmem:[%s4642_s2] sm:$0xff] }
  0x2b   :  { %2026 = vmatprep.subr.bf16.mxu0 %v3145_v11  ;;  %2197 = vmatpush1.bf16.msra.mxu1 %v3140_v12  ;;  %v74_v11 = vsub.s32 2, %v3902_v7  ;;  %v67_v12 = vrot.slane %v3908_v9, %v66_v8 }
  0x2c   :  { %2198 = vmatprep.subr.bf16.mxu1 %v3148_v14  ;;  %v71_v14 = vrot.slane %v3908_v9, %v70_v10 }
  0x2e   :  { %2027 = vmatpush1.bf16.msra.mxu0 %v3143_v13  ;;  %v78_v13 = vsub.s32 3, %v3902_v7 }
  0x2f   :  { %2028 = vmatprep.subr.bf16.mxu0 %v3151_v15  ;;  %2199 = vmatpush1.bf16.msra.mxu1 %v3146_v16  ;;  %v75_v16 = vrot.slane %v3908_v9, %v74_v11 }
  0x30   :  { %2200 = vmatprep.subr.bf16.mxu1 %v3154_v18 }
  0x32   :  { %2029 = vmatpush1.bf16.msra.mxu0 %v3149_v17 }
  0x33   :  { %2030 = vmatprep.subr.bf16.mxu0 %v3157_v19  ;;  %2201 = vmatpush1.bf16.msra.mxu1 %v3152_v20  ;;  %v79_v19 = vrot.slane %v3908_v9, %v78_v13 }
  0x34   :  { %2202 = vmatprep.subr.bf16.mxu1 %v3160_v22 }
  0x36   :  { %2031 = vmatpush1.bf16.msra.mxu0 %v3155_v21 }
  0x37   :  { %2032 = vmatprep.subr.bf16.mxu0 %v3163_v23  ;;  %2203 = vmatpush1.bf16.msra.mxu1 %v3158_v24 }
  0x38   :  { %2204 = vmatprep.subr.bf16.mxu1 %v3166_v26 }
  0x3a   :  { %2033 = vmatpush1.bf16.msra.mxu0 %v3161_v25 }
  0x3b   :  { %2034 = vmatprep.subr.bf16.mxu0 %v3169_v27  ;;  %2205 = vmatpush1.bf16.msra.mxu1 %v3164_v28 }
  0x3c   :  { %2206 = vmatprep.subr.bf16.mxu1 %v3172_v30 }
  0x3e   :  { %2035 = vmatpush1.bf16.msra.mxu0 %v3167_v29 }
  0x3f   :  { %2036 = vmatprep.subr.bf16.mxu0 %v3175_v31  ;;  %2207 = vmatpush1.bf16.msra.mxu1 %v3170_v32 }
  0x40   :  { %2208 = vmatprep.subr.bf16.mxu1 %v3178_v34 }
  0x42   :  { %2037 = vmatpush1.bf16.msra.mxu0 %v3173_v33 }
  0x43   :  { %2038 = vmatprep.subr.bf16.mxu0 %v3181_v35  ;;  %2209 = vmatpush1.bf16.msra.mxu1 %v3176_v36 }
  0x44   :  { %2210 = vmatprep.subr.bf16.mxu1 %v3184_v38 }
  0x46   :  { %2039 = vmatpush1.bf16.msra.mxu0 %v3179_v37 }
  0x47   :  { %2040 = vmatprep.subr.bf16.mxu0 %v3187_v39  ;;  %2211 = vmatpush1.bf16.msra.mxu1 %v3182_v40 }
  0x48   :  { %2212 = vmatprep.subr.bf16.mxu1 %v3190_v42  ;;  %v3230_v42 = vld [vmem:[%s4641_s3 + $0x208] ss:$16 sps:$4 sm:$0xff]  }
  0x4a   :  { %2041 = vmatpush1.bf16.msra.mxu0 %v3185_v41  ;;  %v3227_v41 = vld [vmem:[%s4641_s3 + $0x200] ss:$16 sps:$4 sm:$0xff]  }
  0x4b   :  { %2042 = vmatprep.subr.bf16.mxu0 %v3193_v43  ;;  %2213 = vmatpush1.bf16.msra.mxu1 %v3188_v44  ;;  %v3235_v44 = vld [vmem:[%s4641_s3 + $0x224] ss:$16 sps:$4 sm:$0xff]  }
  0x4c   :  { %2214 = vmatprep.subr.bf16.mxu1 %v3196_v46 }
  0x4e   :  { %2043 = vmatpush1.bf16.msra.mxu0 %v3191_v45  ;;  %v3238_v45 = vld [vmem:[%s4641_s3 + $0x22c] ss:$16 sps:$4 sm:$0xff]  }
  0x4f   :  { %2044 = vmatprep.subr.bf16.mxu0 %v3199_v47  ;;  %2215 = vmatpush1.bf16.msra.mxu1 %v3194_v48  ;;  %v82_v47 = vsub.s32 4, %v3902_v7 }
  0x50   :  { %2216 = vmatprep.subr.bf16.mxu1 %v3202_v50 }
  0x52   :  { %2045 = vmatpush1.bf16.msra.mxu0 %v3197_v49  ;;  %v86_v49 = vsub.s32 5, %v3902_v7 }
  0x53   :  { %2046 = vmatprep.subr.bf16.mxu0 %v3205_v51  ;;  %2217 = vmatpush1.bf16.msra.mxu1 %v3200_v52  ;;  %v3233_v51 = vld [vmem:[%s4641_s3 + $0x220] ss:$16 sps:$4 sm:$0xff]   ;;  %v3236_v52 = vld [vmem:[%s4641_s3 + $0x228] ss:$16 sps:$4 sm:$0xff]  }
  0x54   :  { %2218 = vmatprep.subr.bf16.mxu1 %v3208_v54  ;;  %v3244_v54 = vld [vmem:[%s4641_s3 + $0x24c] ss:$16 sps:$4 sm:$0xff]  }
  0x56   :  { %2047 = vmatpush1.bf16.msra.mxu0 %v3203_v53  ;;  %v3241_v53 = vld [vmem:[%s4641_s3 + $0x244] ss:$16 sps:$4 sm:$0xff]  }
  0x57   :  { %2048 = vmatprep.subr.bf16.mxu0 %v3211_v55  ;;  %2219 = vmatpush1.bf16.msra.mxu1 %v3206_v56  ;;  %v83_v55 = vrot.slane %v3908_v9, %v82_v47  ;;  %v87_v56 = vrot.slane %v3908_v9, %v86_v49  ;;  %v3269_v49 = vld [vmem:[%s4641_s3 + $0x2e0] ss:$16 sps:$4 sm:$0xff]  }
  0x58   :  { %2220 = vmatprep.subr.bf16.mxu1 %v3214_v58  ;;  %v3242_v58 = vld [vmem:[%s4641_s3 + $0x248] ss:$16 sps:$4 sm:$0xff]  }
  0x5a   :  { %2049 = vmatpush1.bf16.msra.mxu0 %v3209_v57  ;;  %v3239_v57 = vld [vmem:[%s4641_s3 + $0x240] ss:$16 sps:$4 sm:$0xff]  }
  0x5b   :  { %2221 = vmatpush1.bf16.msra.mxu1 %v3212_v59  ;;  %2050 = vmatprep.subr.bf16.mxu0 %v3217_v60  ;;  %v3247_v60 = vld [vmem:[%s4641_s3 + $0x264] ss:$16 sps:$4 sm:$0xff]  }
  0x5c   :  { %2222 = vmatprep.subr.bf16.mxu1 %v3220_v61  ;;  %v3250_v61 = vld [vmem:[%s4641_s3 + $0x26c] ss:$16 sps:$4 sm:$0xff]  }
  0x5e   :  { %2051 = vmatpush1.bf16.msra.mxu0 %v3215_v62 }
  0x5f   :  { %2223 = vmatpush1.bf16.msra.mxu1 %v3218_v63  ;;  %2052 = vmatprep.subr.bf16.mxu0 %v3223_v0 }
  0x60   :  { %2224 = vmatprep.subr.bf16.mxu1 %v3226_v1 }
  0x62   :  { %2053 = vmatpush1.bf16.msra.mxu0 %v3221_v2 }
  0x63   :  { %2225 = vmatpush1.bf16.msra.mxu1 %v3224_v3  ;;  %2065 = vmatprep.subr.bf16.mxu0 %v3229_v4 }
  0x64   :  { %2237 = vmatprep.subr.bf16.mxu1 %v3232_v5  ;;  %v3245_v5 = vld [vmem:[%s4641_s3 + $0x260] ss:$16 sps:$4 sm:$0xff]  }
  0xe8   :  { %v302_v15 = vpop.f32.mrb[0].mxu0  ;;  %v345_v24 = vpop.f32.mrb[0].mxu1 }
  0xe9   :  { %v303_v17 = vadd.f32 %v302_v15, %v67_v12  ;;  %v304_v18 = vpop.f32.mrb[1].mxu0  ;;  %v346_v26 = vadd.f32 %v345_v24, %v75_v16  ;;  %v347_v27 = vpop.f32.mrb[1].mxu1  ;;  %v3253_v15 = vld [vmem:[%s4641_s3 + $0x284] ss:$16 sps:$4 sm:$0xff]   ;;  %v3262_v24 = vld [vmem:[%s4641_s3 + $0x2ac] ss:$16 sps:$4 sm:$0xff]  }
  0xea   :  { %v305_v20 = vadd.f32 %v304_v18, %v71_v14  ;;  %v306_v21 = vpop.f32.mrb[2].mxu0  ;;  %v348_v30 = vadd.f32 %v347_v27, %v79_v19  ;;  %v349_v31 = vpop.f32.mrb[2].mxu1  ;;  %v90_v27 = vsub.s32 6, %v3902_v7 }
  0xeb   :  { %v307_v22 = vadd.f32 %v306_v21, %v67_v12  ;;  %v308_v23 = vpop.f32.mrb[3].mxu0  ;;  %v440_v28 = vmax.f32 %v303_v17, 0.0  ;;  %v442_v34 = vmax.f32 %v346_v26, 0.0  ;;  %v350_v35 = vadd.f32 %v349_v31, %v75_v16  ;;  %v351_v36 = vpop.f32.mrb[3].mxu1  ;;  %v3256_v16 = vld [vmem:[%s4641_s3 + $0x28c] ss:$16 sps:$4 sm:$0xff]  }
  0xec   :  { %v309_v25 = vadd.f32 %v308_v23, %v71_v14  ;;  %v441_v32 = vmax.f32 %v305_v20, 0.0  ;;  %v443_v38 = vmax.f32 %v348_v30, 0.0  ;;  %v352_v39 = vadd.f32 %v351_v36, %v79_v19  ;;  %v3251_v20 = vld [vmem:[%s4641_s3 + $0x280] ss:$16 sps:$4 sm:$0xff]   ;;  %v3254_v21 = vld [vmem:[%s4641_s3 + $0x288] ss:$16 sps:$4 sm:$0xff]  }
  0xed   :  { %v448_v29 = vmax.f32 %v307_v22, 0.0  ;;  %v450_v43 = vmax.f32 %v350_v35, 0.0  ;;  %v3259_v23 = vld [vmem:[%s4641_s3 + $0x2a4] ss:$16 sps:$4 sm:$0xff]   ;;  %v3260_v26 = vld [vmem:[%s4641_s3 + $0x2a8] ss:$16 sps:$4 sm:$0xff]  }
  0xee   :  { %v449_v33 = vmax.f32 %v309_v25, 0.0  ;;  %v451_v46 = vmax.f32 %v352_v39, 0.0  ;;  %v3257_v25 = vld [vmem:[%s4641_s3 + $0x2a0] ss:$16 sps:$4 sm:$0xff]   ;;  %v3265_v30 = vld [vmem:[%s4641_s3 + $0x2c4] ss:$16 sps:$4 sm:$0xff]  }
  0xef   :  { %v456_v37 = vpack.c.bf16 %v448_v29, %v440_v28  ;;  %v3938_v48 = vpack.c.bf16 %v450_v43, %v442_v34  ;;  %v94_v29 = vsub.s32 7, %v3902_v7  ;;  %v3268_v31 = vld [vmem:[%s4641_s3 + $0x2cc] ss:$16 sps:$4 sm:$0xff]   ;;  %v3263_v36 = vld [vmem:[%s4641_s3 + $0x2c0] ss:$16 sps:$4 sm:$0xff]  }
  0xf0   :  { %v457_v40 = vpack.c.bf16 %v449_v33, %v441_v32  ;;  %v459_v50 = vpack.c.bf16 %v451_v46, %v443_v38  ;;  %v91_v33 = vrot.slane %v3908_v9, %v90_v27  ;;  %v3317_v27 = vld [vmem:[%s4641_s3 + $0x3e0] ss:$16 sps:$4 sm:$0xff]  }
  0xf1   :  { %v95_v34 = vrot.slane %v3908_v9, %v94_v29  ;;  %v3271_v9 = vld [vmem:[%s4641_s3 + $0x2e4] ss:$16 sps:$4 sm:$0xff]  }
  0xf2   :  { %2054 = vmatprep.mubr.bf16.mxu0 %v457_v40  ;;  %2226 = vmatprep.mubr.bf16.mxu1 %v457_v40  ;;  %v3325_v29 = vld [vmem:[%s4641_s3 + $0x404] ss:$16 sps:$4 sm:$0xff]  }
  0xf3   :  { %2055 = vmatmul.mubr.bf16.vlgmr.msra.gmra.mrb[8].mxu0 %v456_v37  ;;  %2227 = vmatmul.mubr.bf16.vlgmr.msra.gmra.mrb[8].mxu1 %v456_v37  ;;  %v3266_v37 = vld [vmem:[%s4641_s3 + $0x2c8] ss:$16 sps:$4 sm:$0xff]  }
  0xf4   :  { %2066 = vmatpush1.bf16.msra.mxu0 %v3227_v41  ;;  %2238 = vmatpush1.bf16.msra.mxu1 %v3230_v42  ;;  %v3274_v42 = vld [vmem:[%s4641_s3 + $0x2ec] ss:$16 sps:$4 sm:$0xff]  }
  0xf5   :  { %2067 = vmatprep.subr.bf16.mxu0 %v3235_v44  ;;  %2239 = vmatprep.subr.bf16.mxu1 %v3238_v45 }
  0xf6   :  { %2097 = vmatprep.mubr.bf16.mxu0 %v459_v50  ;;  %2269 = vmatprep.mubr.bf16.mxu1 %v459_v50  ;;  %v3272_v50 = vld [vmem:[%s4641_s3 + $0x2e8] ss:$16 sps:$4 sm:$0xff]  }
  0xf8   :  { %2068 = vmatpush1.bf16.msra.mxu0 %v3233_v51  ;;  %2240 = vmatpush1.bf16.msra.mxu1 %v3236_v52  ;;  %v388_v59 = vpop.f32.mrb[4].mxu0  ;;  %v3277_v52 = vld [vmem:[%s4641_s3 + $0x304] ss:$16 sps:$4 sm:$0xff]  }
  0xf9   :  { %2069 = vmatprep.subr.bf16.mxu0 %v3241_v53  ;;  %2241 = vmatprep.subr.bf16.mxu1 %v3244_v54  ;;  %v389_v62 = vadd.f32 %v388_v59, %v83_v55  ;;  %v390_v63 = vpop.f32.mrb[5].mxu0  ;;  %v431_v28 = vpop.f32.mrb[4].mxu1  ;;  %v3280_v53 = vld [vmem:[%s4641_s3 + $0x30c] ss:$16 sps:$4 sm:$0xff]   ;;  %v3281_v59 = vld [vmem:[%s4641_s3 + $0x320] ss:$16 sps:$4 sm:$0xff]  }
  0xfa   :  { %v391_v0 = vadd.f32 %v390_v63, %v87_v56  ;;  %v392_v1 = vpop.f32.mrb[6].mxu0  ;;  %v433_v32 = vpop.f32.mrb[5].mxu1  ;;  %v432_v38 = vadd.f32 %v431_v28, %v91_v33  ;;  %v3287_v63 = vld [vmem:[%s4641_s3 + $0x340] ss:$16 sps:$4 sm:$0xff]   ;;  %v3320_v28 = vld [vmem:[%s4641_s3 + $0x3e8] ss:$16 sps:$4 sm:$0xff]  }
  0xfb   :  { %v444_v2 = vmax.f32 %v389_v62, 0.0  ;;  %v393_v3 = vadd.f32 %v392_v1, %v83_v55  ;;  %v394_v4 = vpop.f32.mrb[7].mxu0  ;;  %v435_v35 = vpop.f32.mrb[6].mxu1  ;;  %v434_v39 = vadd.f32 %v433_v32, %v95_v34  ;;  %v3275_v55 = vld [vmem:[%s4641_s3 + $0x300] ss:$16 sps:$4 sm:$0xff]  }
  0xfc   :  { %2070 = vmatpush1.bf16.msra.mxu0 %v3239_v57  ;;  %2242 = vmatpush1.bf16.msra.mxu1 %v3242_v58  ;;  %v445_v12 = vmax.f32 %v391_v0, 0.0  ;;  %v395_v14 = vadd.f32 %v394_v4, %v87_v56  ;;  %v436_v40 = vadd.f32 %v435_v35, %v91_v33  ;;  %v437_v41 = vpop.f32.mrb[7].mxu1  ;;  %v446_v44 = vmax.f32 %v432_v38, 0.0  ;;  %v3278_v56 = vld [vmem:[%s4641_s3 + $0x308] ss:$16 sps:$4 sm:$0xff]  }
  0xfd   :  { %2071 = vmatprep.subr.bf16.mxu0 %v3247_v60  ;;  %2243 = vmatprep.subr.bf16.mxu1 %v3250_v61  ;;  %v452_v17 = vmax.f32 %v393_v3, 0.0  ;;  %v438_v43 = vadd.f32 %v437_v41, %v95_v34  ;;  %v447_v45 = vmax.f32 %v434_v39, 0.0  ;;  %v3283_v57 = vld [vmem:[%s4641_s3 + $0x324] ss:$16 sps:$4 sm:$0xff]   ;;  %v3286_v58 = vld [vmem:[%s4641_s3 + $0x32c] ss:$16 sps:$4 sm:$0xff]  }
  0xfe   :  { %v453_v18 = vmax.f32 %v395_v14, 0.0  ;;  %v454_v46 = vmax.f32 %v436_v40, 0.0  ;;  %v3284_v60 = vld [vmem:[%s4641_s3 + $0x328] ss:$16 sps:$4 sm:$0xff]   ;;  %v3289_v61 = vld [vmem:[%s4641_s3 + $0x344] ss:$16 sps:$4 sm:$0xff]  }
  0xff   :  { %v3979_v19 = vpack.c.bf16 %v452_v17, %v444_v2  ;;  %v455_v47 = vmax.f32 %v438_v43, 0.0  ;;  %v3292_v62 = vld [vmem:[%s4641_s3 + $0x34c] ss:$16 sps:$4 sm:$0xff]   ;;  %v3290_v0 = vld [vmem:[%s4641_s3 + $0x348] ss:$16 sps:$4 sm:$0xff]  }
 0x100   :  { %2072 = vmatpush1.bf16.msra.mxu0 %v3245_v5  ;;  %2244 = vmatpush1.bf16.msra.mxu1 %v3248_v6  ;;  %v3987_v22 = vpack.c.bf16 %v453_v18, %v445_v12  ;;  %v4029_v51 = vpack.c.bf16 %v454_v46, %v446_v44  ;;  %v3295_v1 = vld [vmem:[%s4641_s3 + $0x364] ss:$16 sps:$4 sm:$0xff]   ;;  %v3298_v2 = vld [vmem:[%s4641_s3 + $0x36c] ss:$16 sps:$4 sm:$0xff]   ;;  %v3293_v3 = vld [vmem:[%s4641_s3 + $0x360] ss:$16 sps:$4 sm:$0xff]  }
 0x101   :  { %2073 = vmatprep.subr.bf16.mxu0 %v3253_v15  ;;  %2245 = vmatprep.subr.bf16.mxu1 %v3256_v16  ;;  %v4037_v54 = vpack.c.bf16 %v455_v47, %v447_v45  ;;  %v3296_v4 = vld [vmem:[%s4641_s3 + $0x368] ss:$16 sps:$4 sm:$0xff]   ;;  %v3301_v5 = vld [vmem:[%s4641_s3 + $0x384] ss:$16 sps:$4 sm:$0xff]   ;;  %v3304_v6 = vld [vmem:[%s4641_s3 + $0x38c] ss:$16 sps:$4 sm:$0xff]  }
 0x102   :  { %v3299_v12 = vld [vmem:[%s4641_s3 + $0x380] ss:$16 sps:$4 sm:$0xff]   ;;  %v3302_v14 = vld [vmem:[%s4641_s3 + $0x388] ss:$16 sps:$4 sm:$0xff]   ;;  %v3307_v15 = vld [vmem:[%s4641_s3 + $0x3a4] ss:$16 sps:$4 sm:$0xff]  }
 0x103   :  { %v3310_v16 = vld [vmem:[%s4641_s3 + $0x3ac] ss:$16 sps:$4 sm:$0xff]   ;;  %v3305_v17 = vld [vmem:[%s4641_s3 + $0x3a0] ss:$16 sps:$4 sm:$0xff]   ;;  %v3308_v18 = vld [vmem:[%s4641_s3 + $0x3a8] ss:$16 sps:$4 sm:$0xff]  }
 0x104   :  { %2074 = vmatpush1.bf16.msra.mxu0 %v3251_v20  ;;  %2246 = vmatpush1.bf16.msra.mxu1 %v3254_v21  ;;  %v3313_v20 = vld [vmem:[%s4641_s3 + $0x3c4] ss:$16 sps:$4 sm:$0xff]   ;;  %v3316_v21 = vld [vmem:[%s4641_s3 + $0x3cc] ss:$16 sps:$4 sm:$0xff]   ;;  %v3326_v32 = vld [vmem:[%s4641_s3 + $0x408] ss:$16 sps:$4 sm:$0xff]  }
 0x105   :  { %2075 = vmatprep.subr.bf16.mxu0 %v3259_v23  ;;  %2247 = vmatprep.subr.bf16.mxu1 %v3262_v24  ;;  %v3311_v23 = vld [vmem:[%s4641_s3 + $0x3c0] ss:$16 sps:$4 sm:$0xff]   ;;  %v3314_v24 = vld [vmem:[%s4641_s3 + $0x3c8] ss:$16 sps:$4 sm:$0xff]   ;;  %v3331_v33 = vld [vmem:[%s4641_s3 + $0x424] ss:$16 sps:$4 sm:$0xff]  }
 0x106   :  { %v3334_v34 = vld [vmem:[%s4641_s3 + $0x42c] ss:$16 sps:$4 sm:$0xff]   ;;  %v3329_v35 = vld [vmem:[%s4641_s3 + $0x420] ss:$16 sps:$4 sm:$0xff]   ;;  %v3338_v39 = vld [vmem:[%s4641_s3 + $0x448] ss:$16 sps:$4 sm:$0xff]  }
 0x107   :  { %v3335_v38 = vld [vmem:[%s4641_s3 + $0x440] ss:$16 sps:$4 sm:$0xff]   ;;  %v3343_v40 = vld [vmem:[%s4641_s3 + $0x464] ss:$16 sps:$4 sm:$0xff]   ;;  %v3346_v41 = vld [vmem:[%s4641_s3 + $0x46c] ss:$16 sps:$4 sm:$0xff]  }
 0x108   :  { %2076 = vmatpush1.bf16.msra.mxu0 %v3257_v25  ;;  %2248 = vmatpush1.bf16.msra.mxu1 %v3260_v26  ;;  %v3319_v25 = vld [vmem:[%s4641_s3 + $0x3e4] ss:$16 sps:$4 sm:$0xff]   ;;  %v3322_v26 = vld [vmem:[%s4641_s3 + $0x3ec] ss:$16 sps:$4 sm:$0xff]   ;;  %v3347_v44 = vld [vmem:[%s4641_s3 + $0x480] ss:$16 sps:$4 sm:$0xff]  }
 0x109   :  { %2077 = vmatprep.subr.bf16.mxu0 %v3265_v30  ;;  %2249 = vmatprep.subr.bf16.mxu1 %v3268_v31  ;;  %v3328_v30 = vld [vmem:[%s4641_s3 + $0x40c] ss:$16 sps:$4 sm:$0xff]   ;;  %v3323_v31 = vld [vmem:[%s4641_s3 + $0x400] ss:$16 sps:$4 sm:$0xff]   ;;  %v3350_v45 = vld [vmem:[%s4641_s3 + $0x488] ss:$16 sps:$4 sm:$0xff]  }
 0x10a   :  { %v3352_v43 = vld [vmem:[%s4641_s3 + $0x48c] ss:$16 sps:$4 sm:$0xff]   ;;  %v3355_v46 = vld [vmem:[%s4641_s3 + $0x4a4] ss:$16 sps:$4 sm:$0xff]  }
 0x10b   :  { %v3358_v47 = vld [vmem:[%s4641_s3 + $0x4ac] ss:$16 sps:$4 sm:$0xff]  }
 0x10c   :  { %2078 = vmatpush1.bf16.msra.mxu0 %v3263_v36  ;;  %2250 = vmatpush1.bf16.msra.mxu1 %v3266_v37  ;;  %v3332_v36 = vld [vmem:[%s4641_s3 + $0x428] ss:$16 sps:$4 sm:$0xff]   ;;  %v3337_v37 = vld [vmem:[%s4641_s3 + $0x444] ss:$16 sps:$4 sm:$0xff]  }
 0x10d   :  { %2079 = vmatprep.subr.bf16.mxu0 %v3271_v9  ;;  %2251 = vmatprep.subr.bf16.mxu1 %v3274_v42  ;;  %v3344_v9 = vld [vmem:[%s4641_s3 + $0x468] ss:$16 sps:$4 sm:$0xff]   ;;  %v3349_v42 = vld [vmem:[%s4641_s3 + $0x484] ss:$16 sps:$4 sm:$0xff]  }
 0x110   :  { %2080 = vmatpush1.bf16.msra.mxu0 %v3269_v49  ;;  %2252 = vmatpush1.bf16.msra.mxu1 %v3272_v50  ;;  %v3353_v49 = vld [vmem:[%s4641_s3 + $0x4a0] ss:$16 sps:$4 sm:$0xff]   ;;  %v3356_v50 = vld [vmem:[%s4641_s3 + $0x4a8] ss:$16 sps:$4 sm:$0xff]  }
 0x111   :  { %2081 = vmatprep.subr.bf16.mxu0 %v3277_v52  ;;  %2253 = vmatprep.subr.bf16.mxu1 %v3280_v53  ;;  %v3361_v52 = vld [vmem:[%s4641_s3 + $0x4c4] ss:$16 sps:$4 sm:$0xff]   ;;  %v3364_v53 = vld [vmem:[%s4641_s3 + $0x4cc] ss:$16 sps:$4 sm:$0xff]  }
 0x114   :  { %2082 = vmatpush1.bf16.msra.mxu0 %v3275_v55  ;;  %2254 = vmatpush1.bf16.msra.mxu1 %v3278_v56  ;;  %v3359_v55 = vld [vmem:[%s4641_s3 + $0x4c0] ss:$16 sps:$4 sm:$0xff]   ;;  %v3362_v56 = vld [vmem:[%s4641_s3 + $0x4c8] ss:$16 sps:$4 sm:$0xff]  }
 0x115   :  { %2083 = vmatprep.subr.bf16.mxu0 %v3283_v57  ;;  %2255 = vmatprep.subr.bf16.mxu1 %v3286_v58  ;;  %v3367_v57 = vld [vmem:[%s4641_s3 + $0x4e4] ss:$16 sps:$4 sm:$0xff]   ;;  %v3370_v58 = vld [vmem:[%s4641_s3 + $0x4ec] ss:$16 sps:$4 sm:$0xff]  }
 0x118   :  { %2084 = vmatpush1.bf16.msra.mxu0 %v3281_v59  ;;  %2256 = vmatpush1.bf16.msra.mxu1 %v3284_v60  ;;  %v3365_v59 = vld [vmem:[%s4641_s3 + $0x4e0] ss:$16 sps:$4 sm:$0xff]   ;;  %v3368_v60 = vld [vmem:[%s4641_s3 + $0x4e8] ss:$16 sps:$4 sm:$0xff]  }
 0x119   :  { %2085 = vmatprep.subr.bf16.mxu0 %v3289_v61  ;;  %2257 = vmatprep.subr.bf16.mxu1 %v3292_v62  ;;  %v3373_v61 = vld [vmem:[%s4641_s3 + $0x504] ss:$16 sps:$4 sm:$0xff]   ;;  %v3376_v62 = vld [vmem:[%s4641_s3 + $0x50c] ss:$16 sps:$4 sm:$0xff]  }
 0x11c   :  { %2086 = vmatpush1.bf16.msra.mxu0 %v3287_v63  ;;  %2258 = vmatpush1.bf16.msra.mxu1 %v3290_v0  ;;  %v3371_v63 = vld [vmem:[%s4641_s3 + $0x500] ss:$16 sps:$4 sm:$0xff]   ;;  %v3374_v0 = vld [vmem:[%s4641_s3 + $0x508] ss:$16 sps:$4 sm:$0xff]  }
 0x11d   :  { %2087 = vmatprep.subr.bf16.mxu0 %v3295_v1  ;;  %2259 = vmatprep.subr.bf16.mxu1 %v3298_v2  ;;  %v3379_v1 = vld [vmem:[%s4641_s3 + $0x524] ss:$16 sps:$4 sm:$0xff]   ;;  %v3382_v2 = vld [vmem:[%s4641_s3 + $0x52c] ss:$16 sps:$4 sm:$0xff]  }
 0x120   :  { %2088 = vmatpush1.bf16.msra.mxu0 %v3293_v3  ;;  %2260 = vmatpush1.bf16.msra.mxu1 %v3296_v4  ;;  %v3377_v3 = vld [vmem:[%s4641_s3 + $0x520] ss:$16 sps:$4 sm:$0xff]   ;;  %v3380_v4 = vld [vmem:[%s4641_s3 + $0x528] ss:$16 sps:$4 sm:$0xff]  }
 0x121   :  { %2089 = vmatprep.subr.bf16.mxu0 %v3301_v5  ;;  %2261 = vmatprep.subr.bf16.mxu1 %v3304_v6  ;;  %v3385_v5 = vld [vmem:[%s4641_s3 + $0x544] ss:$16 sps:$4 sm:$0xff]   ;;  %v3388_v6 = vld [vmem:[%s4641_s3 + $0x54c] ss:$16 sps:$4 sm:$0xff]  }
 0x124   :  { %2090 = vmatpush1.bf16.msra.mxu0 %v3299_v12  ;;  %2262 = vmatpush1.bf16.msra.mxu1 %v3302_v14  ;;  %v3383_v12 = vld [vmem:[%s4641_s3 + $0x540] ss:$16 sps:$4 sm:$0xff]   ;;  %v3386_v14 = vld [vmem:[%s4641_s3 + $0x548] ss:$16 sps:$4 sm:$0xff]  }
 0x125   :  { %2091 = vmatprep.subr.bf16.mxu0 %v3307_v15  ;;  %2263 = vmatprep.subr.bf16.mxu1 %v3310_v16  ;;  %v3391_v15 = vld [vmem:[%s4641_s3 + $0x564] ss:$16 sps:$4 sm:$0xff]   ;;  %v3394_v16 = vld [vmem:[%s4641_s3 + $0x56c] ss:$16 sps:$4 sm:$0xff]  }
 0x128   :  { %2092 = vmatpush1.bf16.msra.mxu0 %v3305_v17  ;;  %2264 = vmatpush1.bf16.msra.mxu1 %v3308_v18  ;;  %v3389_v17 = vld [vmem:[%s4641_s3 + $0x560] ss:$16 sps:$4 sm:$0xff]   ;;  %v3392_v18 = vld [vmem:[%s4641_s3 + $0x568] ss:$16 sps:$4 sm:$0xff]  }
 0x129   :  { %2093 = vmatprep.subr.bf16.mxu0 %v3313_v20  ;;  %2265 = vmatprep.subr.bf16.mxu1 %v3316_v21  ;;  %v3397_v20 = vld [vmem:[%s4641_s3 + $0x584] ss:$16 sps:$4 sm:$0xff]   ;;  %v3400_v21 = vld [vmem:[%s4641_s3 + $0x58c] ss:$16 sps:$4 sm:$0xff]  }
 0x12c   :  { %2094 = vmatpush1.bf16.msra.mxu0 %v3311_v23  ;;  %2266 = vmatpush1.bf16.msra.mxu1 %v3314_v24  ;;  %v3395_v23 = vld [vmem:[%s4641_s3 + $0x580] ss:$16 sps:$4 sm:$0xff]   ;;  %v3398_v24 = vld [vmem:[%s4641_s3 + $0x588] ss:$16 sps:$4 sm:$0xff]  }
 0x12d   :  { %2095 = vmatprep.subr.bf16.mxu0 %v3319_v25  ;;  %2267 = vmatprep.subr.bf16.mxu1 %v3322_v26  ;;  %v3403_v25 = vld [vmem:[%s4641_s3 + $0x5a4] ss:$16 sps:$4 sm:$0xff]   ;;  %v3406_v26 = vld [vmem:[%s4641_s3 + $0x5ac] ss:$16 sps:$4 sm:$0xff]  }
 0x130   :  { %2096 = vmatpush1.bf16.msra.mxu0 %v3317_v27  ;;  %2268 = vmatpush1.bf16.msra.mxu1 %v3320_v28  ;;  %v3401_v27 = vld [vmem:[%s4641_s3 + $0x5a0] ss:$16 sps:$4 sm:$0xff]   ;;  %v3404_v28 = vld [vmem:[%s4641_s3 + $0x5a8] ss:$16 sps:$4 sm:$0xff]  }
 0x131   :  { %2108 = vmatprep.subr.bf16.mxu0 %v3325_v29  ;;  %2280 = vmatprep.subr.bf16.mxu1 %v3328_v30  ;;  %v3409_v29 = vld [vmem:[%s4641_s3 + $0x5c4] ss:$16 sps:$4 sm:$0xff]   ;;  %v3412_v30 = vld [vmem:[%s4641_s3 + $0x5cc] ss:$16 sps:$4 sm:$0xff]  }
 0x133   :  { %2098 = vmatmul.mubr.bf16.vlgmr.msra.gmra.mrb[8].mxu0 %v3938_v48  ;;  %2270 = vmatmul.mubr.bf16.vlgmr.msra.gmra.mrb[8].mxu1 %v3938_v48  ;;  %v3340_v48 = vld [vmem:[%s4641_s3 + $0x44c] ss:$16 sps:$4 sm:$0xff]  }
 0x134   :  { %2109 = vmatpush1.bf16.msra.mxu0 %v3323_v31  ;;  %2281 = vmatpush1.bf16.msra.mxu1 %v3326_v32  ;;  %v3407_v31 = vld [vmem:[%s4641_s3 + $0x5c0] ss:$16 sps:$4 sm:$0xff]   ;;  %v3410_v32 = vld [vmem:[%s4641_s3 + $0x5c8] ss:$16 sps:$4 sm:$0xff]  }
 0x135   :  { %2110 = vmatprep.subr.bf16.mxu0 %v3331_v33  ;;  %2282 = vmatprep.subr.bf16.mxu1 %v3334_v34  ;;  %v3415_v33 = vld [vmem:[%s4641_s3 + $0x5e4] ss:$16 sps:$4 sm:$0xff]   ;;  %v3418_v34 = vld [vmem:[%s4641_s3 + $0x5ec] ss:$16 sps:$4 sm:$0xff]  }
 0x136   :  { %2140 = vmatprep.mubr.bf16.mxu0 %v3987_v22  ;;  %2312 = vmatprep.mubr.bf16.mxu1 %v3987_v22  ;;  %v3341_v22 = vld [vmem:[%s4641_s3 + $0x460] ss:$16 sps:$4 sm:$0xff]  }
 0x138   :  { %2111 = vmatpush1.bf16.msra.mxu0 %v3329_v35  ;;  %2283 = vmatpush1.bf16.msra.mxu1 %v3332_v36  ;;  %v3413_v35 = vld [vmem:[%s4641_s3 + $0x5e0] ss:$16 sps:$4 sm:$0xff]   ;;  %v3416_v36 = vld [vmem:[%s4641_s3 + $0x5e8] ss:$16 sps:$4 sm:$0xff]  }
 0x139   :  { %2112 = vmatprep.subr.bf16.mxu0 %v3337_v37  ;;  %2284 = vmatprep.subr.bf16.mxu1 %v3340_v48  ;;  %v3421_v37 = vld [vmem:[%s4641_s3 + $0x604] ss:$16 sps:$4 sm:$0xff]   ;;  %v3424_v48 = vld [vmem:[%s4641_s3 + $0x60c] ss:$16 sps:$4 sm:$0xff]  }
 0x13c   :  { %2113 = vmatpush1.bf16.msra.mxu0 %v3335_v38  ;;  %2285 = vmatpush1.bf16.msra.mxu1 %v3338_v39  ;;  %v3419_v38 = vld [vmem:[%s4641_s3 + $0x600] ss:$16 sps:$4 sm:$0xff]   ;;  %v3422_v39 = vld [vmem:[%s4641_s3 + $0x608] ss:$16 sps:$4 sm:$0xff]  }
 0x13d   :  { %2114 = vmatprep.subr.bf16.mxu0 %v3343_v40  ;;  %2286 = vmatprep.subr.bf16.mxu1 %v3346_v41  ;;  %v3427_v40 = vld [vmem:[%s4641_s3 + $0x624] ss:$16 sps:$4 sm:$0xff]   ;;  %v3430_v41 = vld [vmem:[%s4641_s3 + $0x62c] ss:$16 sps:$4 sm:$0xff]  }
 0x140   :  { %2115 = vmatpush1.bf16.msra.mxu0 %v3341_v22  ;;  %2287 = vmatpush1.bf16.msra.mxu1 %v3344_v9  ;;  %v3425_v22 = vld [vmem:[%s4641_s3 + $0x620] ss:$16 sps:$4 sm:$0xff]   ;;  %v3428_v9 = vld [vmem:[%s4641_s3 + $0x628] ss:$16 sps:$4 sm:$0xff]  }
 0x141   :  { %2116 = vmatprep.subr.bf16.mxu0 %v3349_v42  ;;  %2288 = vmatprep.subr.bf16.mxu1 %v3352_v43  ;;  %v3433_v42 = vld [vmem:[%s4641_s3 + $0x644] ss:$16 sps:$4 sm:$0xff]   ;;  %v3431_v43 = vld [vmem:[%s4641_s3 + $0x640] ss:$16 sps:$4 sm:$0xff]  }
 0x144   :  { %2117 = vmatpush1.bf16.msra.mxu0 %v3347_v44  ;;  %2289 = vmatpush1.bf16.msra.mxu1 %v3350_v45  ;;  %v3434_v44 = vld [vmem:[%s4641_s3 + $0x648] ss:$16 sps:$4 sm:$0xff]   ;;  %v3439_v45 = vld [vmem:[%s4641_s3 + $0x664] ss:$16 sps:$4 sm:$0xff]  }
 0x145   :  { %2118 = vmatprep.subr.bf16.mxu0 %v3355_v46  ;;  %2290 = vmatprep.subr.bf16.mxu1 %v3358_v47  ;;  %v3437_v46 = vld [vmem:[%s4641_s3 + $0x660] ss:$16 sps:$4 sm:$0xff]   ;;  %v3440_v47 = vld [vmem:[%s4641_s3 + $0x668] ss:$16 sps:$4 sm:$0xff]  }
 0x148   :  { %2119 = vmatpush1.bf16.msra.mxu0 %v3353_v49  ;;  %2291 = vmatpush1.bf16.msra.mxu1 %v3356_v50  ;;  %v3445_v49 = vld [vmem:[%s4641_s3 + $0x684] ss:$16 sps:$4 sm:$0xff]   ;;  %v3448_v50 = vld [vmem:[%s4641_s3 + $0x68c] ss:$16 sps:$4 sm:$0xff]  }
 0x149   :  { %2120 = vmatprep.subr.bf16.mxu0 %v3361_v52  ;;  %2292 = vmatprep.subr.bf16.mxu1 %v3364_v53  ;;  %v3443_v52 = vld [vmem:[%s4641_s3 + $0x680] ss:$16 sps:$4 sm:$0xff]   ;;  %v3446_v53 = vld [vmem:[%s4641_s3 + $0x688] ss:$16 sps:$4 sm:$0xff]  }
 0x14c   :  { %2121 = vmatpush1.bf16.msra.mxu0 %v3359_v55  ;;  %2293 = vmatpush1.bf16.msra.mxu1 %v3362_v56  ;;  %v3451_v55 = vld [vmem:[%s4641_s3 + $0x6a4] ss:$16 sps:$4 sm:$0xff]   ;;  %v3454_v56 = vld [vmem:[%s4641_s3 + $0x6ac] ss:$16 sps:$4 sm:$0xff]  }
 0x14d   :  { %2122 = vmatprep.subr.bf16.mxu0 %v3367_v57  ;;  %2294 = vmatprep.subr.bf16.mxu1 %v3370_v58  ;;  %v3449_v57 = vld [vmem:[%s4641_s3 + $0x6a0] ss:$16 sps:$4 sm:$0xff]   ;;  %v3452_v58 = vld [vmem:[%s4641_s3 + $0x6a8] ss:$16 sps:$4 sm:$0xff]  }
 0x150   :  { %2123 = vmatpush1.bf16.msra.mxu0 %v3365_v59  ;;  %2295 = vmatpush1.bf16.msra.mxu1 %v3368_v60  ;;  %v3457_v59 = vld [vmem:[%s4641_s3 + $0x6c4] ss:$16 sps:$4 sm:$0xff]   ;;  %v3460_v60 = vld [vmem:[%s4641_s3 + $0x6cc] ss:$16 sps:$4 sm:$0xff]  }
 0x151   :  { %2124 = vmatprep.subr.bf16.mxu0 %v3373_v61  ;;  %2296 = vmatprep.subr.bf16.mxu1 %v3376_v62  ;;  %v3455_v61 = vld [vmem:[%s4641_s3 + $0x6c0] ss:$16 sps:$4 sm:$0xff]   ;;  %v3458_v62 = vld [vmem:[%s4641_s3 + $0x6c8] ss:$16 sps:$4 sm:$0xff]  }
 0x154   :  { %2125 = vmatpush1.bf16.msra.mxu0 %v3371_v63  ;;  %2297 = vmatpush1.bf16.msra.mxu1 %v3374_v0  ;;  %v3463_v63 = vld [vmem:[%s4641_s3 + $0x6e4] ss:$16 sps:$4 sm:$0xff]   ;;  %v3466_v0 = vld [vmem:[%s4641_s3 + $0x6ec] ss:$16 sps:$4 sm:$0xff]  }
 0x155   :  { %2126 = vmatprep.subr.bf16.mxu0 %v3379_v1  ;;  %2298 = vmatprep.subr.bf16.mxu1 %v3382_v2  ;;  %v3461_v1 = vld [vmem:[%s4641_s3 + $0x6e0] ss:$16 sps:$4 sm:$0xff]   ;;  %v3464_v2 = vld [vmem:[%s4641_s3 + $0x6e8] ss:$16 sps:$4 sm:$0xff]  }
 0x158   :  { %2127 = vmatpush1.bf16.msra.mxu0 %v3377_v3  ;;  %2299 = vmatpush1.bf16.msra.mxu1 %v3380_v4  ;;  %v3469_v3 = vld [vmem:[%s4641_s3 + $0x704] ss:$16 sps:$4 sm:$0xff]   ;;  %v3472_v4 = vld [vmem:[%s4641_s3 + $0x70c] ss:$16 sps:$4 sm:$0xff]  }
 0x159   :  { %2128 = vmatprep.subr.bf16.mxu0 %v3385_v5  ;;  %2300 = vmatprep.subr.bf16.mxu1 %v3388_v6  ;;  %v3467_v5 = vld [vmem:[%s4641_s3 + $0x700] ss:$16 sps:$4 sm:$0xff]   ;;  %v3470_v6 = vld [vmem:[%s4641_s3 + $0x708] ss:$16 sps:$4 sm:$0xff]  }
 0x15c   :  { %2129 = vmatpush1.bf16.msra.mxu0 %v3383_v12  ;;  %2301 = vmatpush1.bf16.msra.mxu1 %v3386_v14  ;;  %v3475_v12 = vld [vmem:[%s4641_s3 + $0x724] ss:$16 sps:$4 sm:$0xff]   ;;  %v3478_v14 = vld [vmem:[%s4641_s3 + $0x72c] ss:$16 sps:$4 sm:$0xff]  }
 0x15d   :  { %2130 = vmatprep.subr.bf16.mxu0 %v3391_v15  ;;  %2302 = vmatprep.subr.bf16.mxu1 %v3394_v16  ;;  %v3473_v15 = vld [vmem:[%s4641_s3 + $0x720] ss:$16 sps:$4 sm:$0xff]   ;;  %v3476_v16 = vld [vmem:[%s4641_s3 + $0x728] ss:$16 sps:$4 sm:$0xff]  }
 0x160   :  { %2131 = vmatpush1.bf16.msra.mxu0 %v3389_v17  ;;  %2303 = vmatpush1.bf16.msra.mxu1 %v3392_v18  ;;  %v3481_v17 = vld [vmem:[%s4641_s3 + $0x744] ss:$16 sps:$4 sm:$0xff]   ;;  %v3484_v18 = vld [vmem:[%s4641_s3 + $0x74c] ss:$16 sps:$4 sm:$0xff]  }
 0x161   :  { %2132 = vmatprep.subr.bf16.mxu0 %v3397_v20  ;;  %2304 = vmatprep.subr.bf16.mxu1 %v3400_v21  ;;  %v3479_v20 = vld [vmem:[%s4641_s3 + $0x740] ss:$16 sps:$4 sm:$0xff]   ;;  %v3482_v21 = vld [vmem:[%s4641_s3 + $0x748] ss:$16 sps:$4 sm:$0xff]  }
 0x164   :  { %2133 = vmatpush1.bf16.msra.mxu0 %v3395_v23  ;;  %2305 = vmatpush1.bf16.msra.mxu1 %v3398_v24  ;;  %v3487_v23 = vld [vmem:[%s4641_s3 + $0x764] ss:$16 sps:$4 sm:$0xff]   ;;  %v3490_v24 = vld [vmem:[%s4641_s3 + $0x76c] ss:$16 sps:$4 sm:$0xff]  }
 0x165   :  { %2134 = vmatprep.subr.bf16.mxu0 %v3403_v25  ;;  %2306 = vmatprep.subr.bf16.mxu1 %v3406_v26  ;;  %v3485_v25 = vld [vmem:[%s4641_s3 + $0x760] ss:$16 sps:$4 sm:$0xff]   ;;  %v3488_v26 = vld [vmem:[%s4641_s3 + $0x768] ss:$16 sps:$4 sm:$0xff]  }
 0x168   :  { %2135 = vmatpush1.bf16.msra.mxu0 %v3401_v27  ;;  %2307 = vmatpush1.bf16.msra.mxu1 %v3404_v28  ;;  %v3493_v27 = vld [vmem:[%s4641_s3 + $0x784] ss:$16 sps:$4 sm:$0xff]   ;;  %v3496_v28 = vld [vmem:[%s4641_s3 + $0x78c] ss:$16 sps:$4 sm:$0xff]  }
 0x169   :  { %2136 = vmatprep.subr.bf16.mxu0 %v3409_v29  ;;  %2308 = vmatprep.subr.bf16.mxu1 %v3412_v30  ;;  %v3491_v29 = vld [vmem:[%s4641_s3 + $0x780] ss:$16 sps:$4 sm:$0xff]   ;;  %v3494_v30 = vld [vmem:[%s4641_s3 + $0x788] ss:$16 sps:$4 sm:$0xff]  }
 0x16c   :  { %2137 = vmatpush1.bf16.msra.mxu0 %v3407_v31  ;;  %2309 = vmatpush1.bf16.msra.mxu1 %v3410_v32  ;;  %v3499_v31 = vld [vmem:[%s4641_s3 + $0x7a4] ss:$16 sps:$4 sm:$0xff]   ;;  %v3502_v32 = vld [vmem:[%s4641_s3 + $0x7ac] ss:$16 sps:$4 sm:$0xff]  }
 0x16d   :  { %2138 = vmatprep.subr.bf16.mxu0 %v3415_v33  ;;  %2310 = vmatprep.subr.bf16.mxu1 %v3418_v34  ;;  %v3497_v33 = vld [vmem:[%s4641_s3 + $0x7a0] ss:$16 sps:$4 sm:$0xff]   ;;  %v3500_v34 = vld [vmem:[%s4641_s3 + $0x7a8] ss:$16 sps:$4 sm:$0xff]  }
 0x170   :  { %2139 = vmatpush1.bf16.msra.mxu0 %v3413_v35  ;;  %2311 = vmatpush1.bf16.msra.mxu1 %v3416_v36  ;;  %v3505_v35 = vld [vmem:[%s4641_s3 + $0x7c4] ss:$16 sps:$4 sm:$0xff]   ;;  %v3508_v36 = vld [vmem:[%s4641_s3 + $0x7cc] ss:$16 sps:$4 sm:$0xff]  }
 0x171   :  { %2151 = vmatprep.subr.bf16.mxu0 %v3421_v37  ;;  %2323 = vmatprep.subr.bf16.mxu1 %v3424_v48  ;;  %v3503_v37 = vld [vmem:[%s4641_s3 + $0x7c0] ss:$16 sps:$4 sm:$0xff]   ;;  %v3506_v48 = vld [vmem:[%s4641_s3 + $0x7c8] ss:$16 sps:$4 sm:$0xff]  }
 0x173   :  { %2141 = vmatmul.mubr.bf16.vlgmr.msra.gmra.mrb[8].mxu0 %v3979_v19  ;;  %2313 = vmatmul.mubr.bf16.vlgmr.msra.gmra.mrb[8].mxu1 %v3979_v19  ;;  %v3436_v19 = vld [vmem:[%s4641_s3 + $0x64c] ss:$16 sps:$4 sm:$0xff]  }
 0x174   :  { %2152 = vmatpush1.bf16.msra.mxu0 %v3419_v38  ;;  %2324 = vmatpush1.bf16.msra.mxu1 %v3422_v39  ;;  %v3511_v38 = vld [vmem:[%s4641_s3 + $0x7e4] ss:$16 sps:$4 sm:$0xff]   ;;  %v3514_v39 = vld [vmem:[%s4641_s3 + $0x7ec] ss:$16 sps:$4 sm:$0xff]  }
 0x175   :  { %2153 = vmatprep.subr.bf16.mxu0 %v3427_v40  ;;  %2325 = vmatprep.subr.bf16.mxu1 %v3430_v41  ;;  %v3509_v40 = vld [vmem:[%s4641_s3 + $0x7e0] ss:$16 sps:$4 sm:$0xff]   ;;  %v3512_v41 = vld [vmem:[%s4641_s3 + $0x7e8] ss:$16 sps:$4 sm:$0xff]  }
 0x176   :  { %2183 = vmatprep.mubr.bf16.mxu0 %v4037_v54  ;;  %2355 = vmatprep.mubr.bf16.mxu1 %v4037_v54  ;;  %v3442_v54 = vld [vmem:[%s4641_s3 + $0x66c] ss:$16 sps:$4 sm:$0xff]  }
 0x178   :  { %2154 = vmatpush1.bf16.msra.mxu0 %v3425_v22  ;;  %2326 = vmatpush1.bf16.msra.mxu1 %v3428_v9  ;;  %v3515_v22 = vld [vmem:[%s4643_s5 + $0x40] sm:$0xff]  }
 0x179   :  { %2155 = vmatprep.subr.bf16.mxu0 %v3433_v42  ;;  %2327 = vmatprep.subr.bf16.mxu1 %v3436_v19  ;;  %v3516_v9 = vld [vmem:[%s4643_s5 + $0xc0] sm:$0xff]  }
 0x17a   :  { %v3517_v42 = vld [vmem:[%s4643_s5] sm:$0xff]  }
 0x17b   :  { %v3518_v19 = vld [vmem:[%s4643_s5 + $0x80] sm:$0xff]  }
 0x17c   :  { %2156 = vmatpush1.bf16.msra.mxu0 %v3431_v43  ;;  %2328 = vmatpush1.bf16.msra.mxu1 %v3434_v44  ;;  %v3519_v43 = vld [vmem:[%s4643_s5 + $0x48] sm:$0xff]  }
 0x17d   :  { %2157 = vmatprep.subr.bf16.mxu0 %v3439_v45  ;;  %2329 = vmatprep.subr.bf16.mxu1 %v3442_v54  ;;  %v3520_v44 = vld [vmem:[%s4643_s5 + $0xc8] sm:$0xff]  }
 0x17e   :  { %v3521_v45 = vld [vmem:[%s4643_s5 + $0x8] sm:$0xff]  }
 0x17f   :  { %v3522_v54 = vld [vmem:[%s4643_s5 + $0x88] sm:$0xff]  }
 0x180   :  { %2158 = vmatpush1.bf16.msra.mxu0 %v3437_v46  ;;  %2330 = vmatpush1.bf16.msra.mxu1 %v3440_v47  ;;  %v3523_v46 = vld [vmem:[%s4643_s5 + $0x50] sm:$0xff]  }
 0x181   :  { %2159 = vmatprep.subr.bf16.mxu0 %v3445_v49  ;;  %2331 = vmatprep.subr.bf16.mxu1 %v3448_v50  ;;  %v3525_v47 = vld [vmem:[%s4643_s5 + $0x10] sm:$0xff]   ;;  %v3527_v50 = vld [vmem:[%s4643_s5 + $0x58] sm:$0xff]  }
 0x182   :  { %v3526_v49 = vld [vmem:[%s4643_s5 + $0x90] sm:$0xff]  }
 0x184   :  { %2160 = vmatpush1.bf16.msra.mxu0 %v3443_v52  ;;  %2332 = vmatpush1.bf16.msra.mxu1 %v3446_v53  ;;  %v3528_v52 = vld [vmem:[%s4643_s5 + $0xd8] sm:$0xff]  }
 0x185   :  { %2161 = vmatprep.subr.bf16.mxu0 %v3451_v55  ;;  %2333 = vmatprep.subr.bf16.mxu1 %v3454_v56  ;;  %v3529_v53 = vld [vmem:[%s4643_s5 + $0x18] sm:$0xff]   ;;  %v3531_v56 = vld [vmem:[%s4643_s5 + $0x60] sm:$0xff]  }
 0x186   :  { %v3530_v55 = vld [vmem:[%s4643_s5 + $0x98] sm:$0xff]  }
 0x188   :  { %2162 = vmatpush1.bf16.msra.mxu0 %v3449_v57  ;;  %2334 = vmatpush1.bf16.msra.mxu1 %v3452_v58  ;;  %v3532_v57 = vld [vmem:[%s4643_s5 + $0xe0] sm:$0xff]  }
 0x189   :  { %2163 = vmatprep.subr.bf16.mxu0 %v3457_v59  ;;  %2335 = vmatprep.subr.bf16.mxu1 %v3460_v60  ;;  %v3533_v58 = vld [vmem:[%s4643_s5 + $0x20] sm:$0xff]   ;;  %v3535_v60 = vld [vmem:[%s4643_s5 + $0x68] sm:$0xff]  }
 0x18a   :  { %v3534_v59 = vld [vmem:[%s4643_s5 + $0xa0] sm:$0xff]  }
 0x18c   :  { %2164 = vmatpush1.bf16.msra.mxu0 %v3455_v61  ;;  %2336 = vmatpush1.bf16.msra.mxu1 %v3458_v62  ;;  %v3536_v61 = vld [vmem:[%s4643_s5 + $0xe8] sm:$0xff]  }
 0x18d   :  { %2165 = vmatprep.subr.bf16.mxu0 %v3463_v63  ;;  %2337 = vmatprep.subr.bf16.mxu1 %v3466_v0  ;;  %v3537_v62 = vld [vmem:[%s4643_s5 + $0x28] sm:$0xff]   ;;  %v3539_v0 = vld [vmem:[%s4643_s5 + $0x70] sm:$0xff]  }
 0x18e   :  { %v3538_v63 = vld [vmem:[%s4643_s5 + $0xa8] sm:$0xff]  }
 0x190   :  { %2166 = vmatpush1.bf16.msra.mxu0 %v3461_v1  ;;  %2338 = vmatpush1.bf16.msra.mxu1 %v3464_v2  ;;  %v3540_v1 = vld [vmem:[%s4643_s5 + $0xf0] sm:$0xff]  }
 0x191   :  { %2167 = vmatprep.subr.bf16.mxu0 %v3469_v3  ;;  %2339 = vmatprep.subr.bf16.mxu1 %v3472_v4  ;;  %v3541_v2 = vld [vmem:[%s4643_s5 + $0x30] sm:$0xff]   ;;  %v3543_v4 = vld [vmem:[%s4643_s5 + $0x78] sm:$0xff]  }
 0x192   :  { %v3542_v3 = vld [vmem:[%s4643_s5 + $0xb0] sm:$0xff]  }
 0x194   :  { %2168 = vmatpush1.bf16.msra.mxu0 %v3467_v5  ;;  %2340 = vmatpush1.bf16.msra.mxu1 %v3470_v6  ;;  %v3544_v5 = vld [vmem:[%s4643_s5 + $0xf8] sm:$0xff]  }
 0x195   :  { %2169 = vmatprep.subr.bf16.mxu0 %v3475_v12  ;;  %2341 = vmatprep.subr.bf16.mxu1 %v3478_v14  ;;  %v3545_v6 = vld [vmem:[%s4643_s5 + $0x38] sm:$0xff]   ;;  %v720_v14 = vld [vmem:[%s4644_s4] sm:$0xf] }
 0x196   :  { %v3546_v12 = vld [vmem:[%s4643_s5 + $0xb8] sm:$0xff]  }
 0x198   :  { %2170 = vmatpush1.bf16.msra.mxu0 %v3473_v15  ;;  %2342 = vmatpush1.bf16.msra.mxu1 %v3476_v16  ;;  %v725_v15 = vrot.slane %v720_v14, %v66_v8  ;;  %v733_v16 = vrot.slane %v720_v14, %v74_v11 }
 0x199   :  { %2171 = vmatprep.subr.bf16.mxu0 %v3481_v17  ;;  %2343 = vmatprep.subr.bf16.mxu1 %v3484_v18  ;;  %v729_v17 = vrot.slane %v720_v14, %v70_v10  ;;  %v737_v18 = vrot.slane %v720_v14, %v78_v13 }
 0x19c   :  { %2172 = vmatpush1.bf16.msra.mxu0 %v3479_v20  ;;  %2344 = vmatpush1.bf16.msra.mxu1 %v3482_v21 }
 0x19d   :  { %2173 = vmatprep.subr.bf16.mxu0 %v3487_v23  ;;  %2345 = vmatprep.subr.bf16.mxu1 %v3490_v24 }
 0x1a0   :  { %2174 = vmatpush1.bf16.msra.mxu0 %v3485_v25  ;;  %2346 = vmatpush1.bf16.msra.mxu1 %v3488_v26 }
 0x1a1   :  { %2175 = vmatprep.subr.bf16.mxu0 %v3493_v27  ;;  %2347 = vmatprep.subr.bf16.mxu1 %v3496_v28 }
 0x1a4   :  { %2176 = vmatpush1.bf16.msra.mxu0 %v3491_v29  ;;  %2348 = vmatpush1.bf16.msra.mxu1 %v3494_v30 }
 0x1a5   :  { %2177 = vmatprep.subr.bf16.mxu0 %v3499_v31  ;;  %2349 = vmatprep.subr.bf16.mxu1 %v3502_v32 }
 0x1a8   :  { %2178 = vmatpush1.bf16.msra.mxu0 %v3497_v33  ;;  %2350 = vmatpush1.bf16.msra.mxu1 %v3500_v34 }
 0x1a9   :  { %2179 = vmatprep.subr.bf16.mxu0 %v3505_v35  ;;  %2351 = vmatprep.subr.bf16.mxu1 %v3508_v36 }
 0x1ac   :  { %2180 = vmatpush1.bf16.msra.mxu0 %v3503_v37  ;;  %2352 = vmatpush1.bf16.msra.mxu1 %v3506_v48 }
 0x1ad   :  { %2181 = vmatprep.subr.bf16.mxu0 %v3511_v38  ;;  %2353 = vmatprep.subr.bf16.mxu1 %v3514_v39 }
 0x1b0   :  { %2182 = vmatpush1.bf16.msra.mxu0 %v3509_v40  ;;  %2354 = vmatpush1.bf16.msra.mxu1 %v3512_v41 }
 0x1b1   :  { %3054 = vmatprep.subr.bf16.mxu0 %v3515_v22  ;;  %3076 = vmatprep.subr.bf16.mxu1 %v3516_v9 }
 0x1b3   :  { %2184 = vmatmul.mubr.bf16.vlgmr.msra.gmra.mrb[8].mxu0 %v4029_v51  ;;  %2356 = vmatmul.mubr.bf16.vlgmr.msra.gmra.mrb[8].mxu1 %v4029_v51  ;;  %v3524_v51 = vld [vmem:[%s4643_s5 + $0xd0] sm:$0xff]  }
 0x1b4   :  { %3055 = vmatpush3.bf16.msra.mxu0 %v3517_v42  ;;  %3077 = vmatpush3.bf16.msra.mxu1 %v3518_v19  ;;  %v3021_v19 = vld [vmem:[%s4645_s6] ss:$0 sm:$0xff] }
 0x1b5   :  { %3056 = vmatprep.subr.bf16.mxu0 %v3519_v43  ;;  %3078 = vmatprep.subr.bf16.mxu1 %v3520_v44 }
 0x1b8   :  { %3057 = vmatpush3.bf16.msra.mxu0 %v3521_v45  ;;  %3079 = vmatpush3.bf16.msra.mxu1 %v3522_v54 }
 0x1b9   :  { %3058 = vmatprep.subr.bf16.mxu0 %v3523_v46  ;;  %3080 = vmatprep.subr.bf16.mxu1 %v3524_v51 }
 0x1bc   :  { %3059 = vmatpush3.bf16.msra.mxu0 %v3525_v47  ;;  %3081 = vmatpush3.bf16.msra.mxu1 %v3526_v49 }
 0x1bd   :  { %3060 = vmatprep.subr.bf16.mxu0 %v3527_v50  ;;  %3082 = vmatprep.subr.bf16.mxu1 %v3528_v52 }
 0x1c0   :  { %3061 = vmatpush3.bf16.msra.mxu0 %v3529_v53  ;;  %3083 = vmatpush3.bf16.msra.mxu1 %v3530_v55 }
 0x1c1   :  { %3062 = vmatprep.subr.bf16.mxu0 %v3531_v56  ;;  %3084 = vmatprep.subr.bf16.mxu1 %v3532_v57 }
 0x1c4   :  { %3063 = vmatpush3.bf16.msra.mxu0 %v3533_v58  ;;  %3085 = vmatpush3.bf16.msra.mxu1 %v3534_v59 }
 0x1c5   :  { %3064 = vmatprep.subr.bf16.mxu0 %v3535_v60  ;;  %3086 = vmatprep.subr.bf16.mxu1 %v3536_v61 }
 0x1c8   :  { %3065 = vmatpush3.bf16.msra.mxu0 %v3537_v62  ;;  %3087 = vmatpush3.bf16.msra.mxu1 %v3538_v63 }
 0x1c9   :  { %3066 = vmatprep.subr.bf16.mxu0 %v3539_v0  ;;  %3088 = vmatprep.subr.bf16.mxu1 %v3540_v1 }
 0x1cc   :  { %3067 = vmatpush3.bf16.msra.mxu0 %v3541_v2  ;;  %3089 = vmatpush3.bf16.msra.mxu1 %v3542_v3 }
 0x1cd   :  { %3068 = vmatprep.subr.bf16.mxu0 %v3543_v4  ;;  %3090 = vmatprep.subr.bf16.mxu1 %v3544_v5 }
 0x1d0   :  { %3069 = vmatpush3.bf16.msra.mxu0 %v3545_v6  ;;  %3091 = vmatpush3.bf16.msra.mxu1 %v3546_v12 }
 0x286   :  { %v2185_v20 = vpop.f32.mrb[8].mxu0  ;;  %v2357_v21 = vpop.f32.mrb[8].mxu1 }
 0x287   :  { %v3098_v23 = vadd.f32 %v2185_v20, %v725_v15  ;;  %v3102_v24 = vadd.f32 %v2357_v21, %v733_v16  ;;  %v2187_v25 = vpop.f32.mrb[9].mxu0  ;;  %v2359_v26 = vpop.f32.mrb[9].mxu1 }
 0x288   :  { %v3099_v27 = vadd.f32 %v2187_v25, %v729_v17  ;;  %v3103_v28 = vadd.f32 %v2359_v26, %v737_v18  ;;  %v2189_v29 = vpop.f32.mrb[10].mxu0  ;;  %v2361_v30 = vpop.f32.mrb[10].mxu1 }
 0x289   :  { %v3100_v8 = vadd.f32 %v2189_v29, %v725_v15  ;;  %v3104_v31 = vadd.f32 %v2361_v30, %v733_v16  ;;  %v2191_v32 = vpop.f32.mrb[11].mxu0  ;;  %v2363_v11 = vpop.f32.mrb[11].mxu1  ;;  %v2366_v10 = vmax.f32 %v3098_v23, 0.0  ;;  %v2368_v35 = vmax.f32 %v3102_v24, 0.0 }
 0x28a   :  { %v3101_v33 = vadd.f32 %v2191_v32, %v729_v17  ;;  %v3105_v34 = vadd.f32 %v2363_v11, %v737_v18  ;;  %v2367_v36 = vmax.f32 %v3099_v27, 0.0  ;;  %v2369_v37 = vmax.f32 %v3103_v28, 0.0 }
 0x28b   :  { %v2370_v7 = vmax.f32 %v3100_v8, 0.0  ;;  %v2372_v13 = vmax.f32 %v3104_v31, 0.0 }
 0x28c   :  { %v2371_v48 = vmax.f32 %v3101_v33, 0.0  ;;  %v2373_v38 = vmax.f32 %v3105_v34, 0.0 }
 0x28d   :  { %v2374_v39 = vpack.c.bf16 %v2370_v7, %v2366_v10  ;;  %v2376_v40 = vpack.c.bf16 %v2372_v13, %v2368_v35 }
 0x28e   :  { %v2375_v41 = vpack.c.bf16 %v2371_v48, %v2367_v36  ;;  %v2377_v22 = vpack.c.bf16 %v2373_v38, %v2369_v37 }
 0x290   :  { %2673 = vmatprep.mubr.bf16.mxu0 %v2375_v41  ;;  %2714 = vmatprep.mubr.bf16.mxu1 %v2377_v22 }
 0x291   :  { %2674 = vmatmul.mubr.bf16.vlgmr.msra.gmra.mrb[12].mxu0 %v2374_v39  ;;  %2715 = vmatmul.mubr.bf16.vlgmr.msra.gmra.mrb[12].mxu1 %v2376_v40 }
 0x364   :  { %v3070_v9 = vpop.f32.mrb[12].mxu0  ;;  %v3092_v42 = vpop.f32.mrb[12].mxu1 }
 0x365   :  { %v3071_v43 = vpop.f32.mrb[13].mxu0  ;;  %v3093_v44 = vpop.f32.mrb[13].mxu1 }
 0x366   :  { %v3072_v45 = vadd.f32 %v3071_v43, %v3070_v9  ;;  %v3094_v54 = vadd.f32 %v3093_v44, %v3092_v42  ;;  %v3073_v46 = vpop.f32.mrb[14].mxu0  ;;  %v3095_v51 = vpop.f32.mrb[14].mxu1 }
 0x367   :  { %v3074_v47 = vpop.f32.mrb[15].mxu0  ;;  %v3096_v49 = vpop.f32.mrb[15].mxu1 }
 0x368   :  { %v2676_v50 = vadd.f32 %v3072_v45, %v3021_v19  ;;  %v3075_v52 = vadd.f32 %v3074_v47, %v3073_v46  ;;  %v3097_v53 = vadd.f32 %v3096_v49, %v3095_v51 }
 0x36a   :  { %v2717_v55 = vadd.f32 %v3094_v54, %v2676_v50  ;;  %v2679_v56 = vadd.f32 %v3075_v52, %v3021_v19 }
 0x36c   :  { %2723 = vst [vmem:[%s4646_s7] sm:$0xff] %v2717_v55  ;;  %v2720_v57 = vadd.f32 %v3097_v53, %v2679_v56 }
 0x36e   :  { %2724 = vst [vmem:[%s4646_s7 + $0x8] sm:$0xff] %v2720_v57 }

</bundles_post_ra>
